<compile_context>
chip_gen: v7x
topology: tpu7x:2x2x1
jax: 0.10.0
libtpu: 0.0.40
codegen_flags: <defaults>
</compile_context>

<pallas_src>
import math
import functools

import jax
import jax.numpy as jnp
from jax import lax
from jax.experimental import pallas as pl
from jax.experimental.pallas import tpu as pltpu


# ---------------------------------------------------------------------------
# Pallas kernel: the full encoder-layer stack (grid = (batch, layer)).
# ---------------------------------------------------------------------------
def _layer_norm(x, gamma, beta, eps=1e-5):
    # matches LayerNormalization: biased variance over last dim, eps inside sqrt
    mean = jnp.mean(x, axis=-1, keepdims=True)
    var = jnp.mean(jnp.square(x - mean), axis=-1, keepdims=True)
    return gamma * ((x - mean) * lax.rsqrt(var + eps)) + beta


def encoder_stack_kernel(x_ref, mask_ref,
                         wq_ref, bq_ref, wkvT_ref, bkvT_ref,
                         wo_ref, bo_ref,
                         g1_ref, be1_ref,
                         w1_ref, b1_ref, w2_ref, b2_ref,
                         g2_ref, be2_ref,
                         out_ref, *, num_heads, head_dim):
    l = pl.program_id(1)
    _, S, D = out_ref.shape
    H, hd = num_heads, head_dim

    # Output blocks are never pre-loaded from HBM: seed the VMEM-resident
    # activation carry from x once per batch row.  (x is aliased onto the
    # output HBM buffer via input_output_aliases, so there is no extra HBM
    # allocation for the carry.)
    @pl.when(l == 0)
    def _():
        out_ref[...] = x_ref[...]

    x = out_ref[...].reshape(S, D)            # (S, D) f32 carried activation
    x_bf = x.astype(jnp.bfloat16)
    mask = mask_ref[...].reshape(S, S)        # (S, S) additive attention mask

    # ---------------- multi-head self-attention (head-batched) ----------------
    # Q: one batched (H,S,D)@(H,D,hd) matmul; softmax scale pre-folded into wq/bq.
    xb = jnp.broadcast_to(x_bf[None], (H, S, D))
    q = jnp.einsum('hsD,hDd->hsd', xb, wq_ref[0],
                   preferred_element_type=jnp.float32) + bq_ref[0]       # (H,S,hd)

    # K, V: computed directly in transposed (head, dim, seq) layout from one
    # (2D, D) @ (D, S) matmul, so the head split is a sublane-aligned reshape.
    xT = jnp.transpose(x).astype(jnp.bfloat16)                            # (D, S)
    kvT = jnp.dot(wkvT_ref[0], xT,
                  preferred_element_type=jnp.float32) + bkvT_ref[0]       # (2D, S)
    kT = kvT[:D].reshape(H, hd, S).astype(jnp.bfloat16)                   # (H,hd,S)
    vT = kvT[D:].reshape(H, hd, S).astype(jnp.bfloat16)                   # (H,hd,S)

    # scores for all heads at once; mask added once (broadcast over H and q).
    s = jnp.einsum('hqd,hdk->hqk', q.astype(jnp.bfloat16), kT,
                   preferred_element_type=jnp.float32) + mask             # (H,S,S)
    m = jnp.max(s, axis=-1, keepdims=True)                                # f32 softmax
    e = jnp.exp(s - m)
    p = e * pl.reciprocal(jnp.sum(e, axis=-1, keepdims=True), approx=True)

    # P·V in (head, dim, seq) layout; heads merge on the sublane axis for free,
    # a single 2-D transpose gives the lane-dense (S, D) concat -> K=128 Wo matmul.
    ctxT = jnp.einsum('hdk,hqk->hdq', vT, p.astype(jnp.bfloat16),
                      preferred_element_type=jnp.float32)                 # (H,hd,S)
    ctx = jnp.transpose(ctxT.reshape(D, S)).astype(jnp.bfloat16)          # (S, D)
    attn = jnp.dot(ctx, wo_ref[0],
                   preferred_element_type=jnp.float32) + bo_ref[0]        # (S, D)

    # dropout1 identity (eval semantics); add & norm
    x1 = _layer_norm(attn + x, g1_ref[0], be1_ref[0])

    # ---------------- position-wise feed-forward ----------------
    h1 = jnp.dot(x1.astype(jnp.bfloat16), w1_ref[0],
                 preferred_element_type=jnp.float32) + b1_ref[0]
    h1 = jnp.maximum(h1, 0.0)                                             # ReLU
    h2 = jnp.dot(h1.astype(jnp.bfloat16), w2_ref[0],
                 preferred_element_type=jnp.float32) + b2_ref[0]

    # dropout2 identity (eval semantics); add & norm
    y = _layer_norm(h2 + x1, g2_ref[0], be2_ref[0])
    out_ref[...] = y.reshape(1, S, D)


@functools.partial(jax.jit, static_argnames=("num_heads",))
def encoder_stack(x, mask, packed, *, num_heads):
    """Run the whole encoder layer stack in a single pallas_call.

    x: (B, S, D) f32.  mask: (B, S, S) f32 additive attention mask.
    packed: dict of per-layer weights stacked on a leading layer axis.
    """
    B, S, D = x.shape
    L, _, F = packed["w1"].shape
    head_dim = D // num_heads

    kernel = functools.partial(encoder_stack_kernel,
                               num_heads=num_heads, head_dim=head_dim)

    in_specs = [
        pl.BlockSpec((1, S, D), lambda b, l: (b, 0, 0)),                      # x
        pl.BlockSpec((1, S, S), lambda b, l: (b, 0, 0)),                      # mask
        pl.BlockSpec((1, num_heads, D, head_dim), lambda b, l: (l, 0, 0, 0)),  # wq
        pl.BlockSpec((1, num_heads, 1, head_dim), lambda b, l: (l, 0, 0, 0)),  # bq
        pl.BlockSpec((1, 2 * D, D), lambda b, l: (l, 0, 0)),                  # wkvT
        pl.BlockSpec((1, 2 * D, 1), lambda b, l: (l, 0, 0)),                  # bkvT
        pl.BlockSpec((1, D, D), lambda b, l: (l, 0, 0)),                      # w_o
        pl.BlockSpec((1, 1, D), lambda b, l: (l, 0, 0)),                      # b_o
        pl.BlockSpec((1, 1, D), lambda b, l: (l, 0, 0)),                      # gamma1
        pl.BlockSpec((1, 1, D), lambda b, l: (l, 0, 0)),                      # beta1
        pl.BlockSpec((1, D, F), lambda b, l: (l, 0, 0)),                      # w1
        pl.BlockSpec((1, 1, F), lambda b, l: (l, 0, 0)),                      # b1
        pl.BlockSpec((1, F, D), lambda b, l: (l, 0, 0)),                      # w2
        pl.BlockSpec((1, 1, D), lambda b, l: (l, 0, 0)),                      # b2
        pl.BlockSpec((1, 1, D), lambda b, l: (l, 0, 0)),                      # gamma2
        pl.BlockSpec((1, 1, D), lambda b, l: (l, 0, 0)),                      # beta2
    ]

    return pl.pallas_call(
        kernel,
        out_shape=jax.ShapeDtypeStruct((B, S, D), jnp.float32),
        grid=(B, L),
        in_specs=in_specs,
        # Constant block index across the layer axis -> output stays resident in
        # VMEM and acts as the layer-to-layer activation carry (per batch row).
        out_specs=pl.BlockSpec((1, S, D), lambda b, l: (b, 0, 0)),
        input_output_aliases={0: 0},          # x shares the output HBM buffer
        compiler_params=pltpu.CompilerParams(
            dimension_semantics=("parallel", "arbitrary"),
            vmem_limit_bytes=48 * 1024 * 1024),   # headroom under v7x's 64 MiB
    )(x, mask,
      packed["wq"], packed["bq"], packed["wkvT"], packed["bkvT"],
      packed["w_o"], packed["b_o"],
      packed["gamma1"], packed["beta1"],
      packed["w1"], packed["b1"], packed["w2"], packed["b2"],
      packed["gamma2"], packed["beta2"])


# ---------------------------------------------------------------------------
# Parameters (reference layout) + packing for the kernel.
# ---------------------------------------------------------------------------
def init_layer_params(key, d_model, ffn_hidden):
    ks = jax.random.split(key, 8)

    def linear(kw, kb, fan_in, fan_out):
        bound = 1.0 / math.sqrt(fan_in)
        w = jax.random.uniform(kw, (fan_in, fan_out), jnp.float32, -bound, bound)
        b = jax.random.uniform(kb, (1, fan_out), jnp.float32, -bound, bound)
        return w, b

    w_qkv, b_qkv = linear(ks[0], ks[1], d_model, 3 * d_model)
    w_o, b_o = linear(ks[2], ks[3], d_model, d_model)
    w1, b1 = linear(ks[4], ks[5], d_model, ffn_hidden)
    w2, b2 = linear(ks[6], ks[7], ffn_hidden, d_model)
    return dict(
        w_qkv=w_qkv, b_qkv=b_qkv, w_o=w_o, b_o=b_o,
        gamma1=jnp.ones((1, d_model), jnp.float32),
        beta1=jnp.zeros((1, d_model), jnp.float32),
        w1=w1, b1=b1, w2=w2, b2=b2,
        gamma2=jnp.ones((1, d_model), jnp.float32),
        beta2=jnp.zeros((1, d_model), jnp.float32),
    )


def pack_params(layer_params, num_heads):
    """Stack per-layer params on a leading layer axis and re-layout for the kernel.

    The reference qkv_layer (reshape(B,S,H,3*hd) -> chunk(3)) implies a per-head
    interleaved [q_h | k_h | v_h] column order.  Done ONCE here (outside the
    kernel):
      * wq  -> (H, D, hd)  with the 1/sqrt(hd) softmax scale folded in (bq too).
      * wkvT-> (2D, D) transposed K/V weights (head-blocked rows) so the kernel
               gets K,V directly in (head, dim, seq) layout.
    Matmul weights are cast to bf16 (f32 accumulation in-kernel); biases and
    LayerNorm params stay f32.
    """
    D = layer_params[0]["w_qkv"].shape[0]
    H = num_heads
    hd = D // H
    scale = 1.0 / math.sqrt(hd)

    def pack_layer(p):
        w = p["w_qkv"].reshape(D, H, 3, hd)          # column index = (h, {q,k,v}, d)
        b = p["b_qkv"].reshape(H, 3, hd)
        wq = jnp.transpose(w[:, :, 0, :], (1, 0, 2)) * scale            # (H, D, hd)
        bq = (b[:, 0, :] * scale)[:, None, :]                           # (H, 1, hd)
        wkT = jnp.transpose(w[:, :, 1, :], (1, 2, 0)).reshape(D, D)     # rows = K cols
        wvT = jnp.transpose(w[:, :, 2, :], (1, 2, 0)).reshape(D, D)     # rows = V cols
        wkvT = jnp.concatenate([wkT, wvT], axis=0)                      # (2D, D)
        bkvT = jnp.concatenate([b[:, 1, :].reshape(-1),
                                b[:, 2, :].reshape(-1)])[:, None]       # (2D, 1)
        return dict(
            wq=wq.astype(jnp.bfloat16), bq=bq,
            wkvT=wkvT.astype(jnp.bfloat16), bkvT=bkvT,
            w_o=p["w_o"].astype(jnp.bfloat16), b_o=p["b_o"],
            gamma1=p["gamma1"], beta1=p["beta1"],
            w1=p["w1"].astype(jnp.bfloat16), b1=p["b1"],
            w2=p["w2"].astype(jnp.bfloat16), b2=p["b2"],
            gamma2=p["gamma2"], beta2=p["beta2"],
        )

    per_layer = [pack_layer(p) for p in layer_params]
    return {k: jnp.stack([lp[k] for lp in per_layer]) for k in per_layer[0]}


# ---------------------------------------------------------------------------
# Glue: positional encoding, tokenization, embedding.
# ---------------------------------------------------------------------------
def positional_encoding(d_model, max_seq):
    even_i = jnp.arange(0, d_model, 2, dtype=jnp.float32)
    denom = jnp.power(10000.0, even_i / d_model)
    pos = jnp.arange(max_seq, dtype=jnp.float32).reshape(max_seq, 1)
    even_pe = jnp.sin(pos / denom)
    odd_pe = jnp.cos(pos / denom)
    pe = jnp.stack([even_pe, odd_pe], axis=2).reshape(max_seq, d_model)
    return pe


def batch_tokenize(batch, lang_to_idx, max_seq, start_tok, end_tok, pad_tok,
                   start_token=True, end_token=True):
    # TODO(synk): string tokenization is host-side Python; no Pallas equivalent.
    rows = []
    for sentence in batch:
        ids = [lang_to_idx[c] for c in list(sentence)]
        if start_token:
            ids.insert(0, lang_to_idx[start_tok])
        if end_token:
            ids.append(lang_to_idx[end_tok])
        while len(ids) < max_seq:
            ids.append(lang_to_idx[pad_tok])
        rows.append(ids[:max_seq])
    return jnp.asarray(rows, dtype=jnp.int32)


def encoder_forward(sentences, mask, embedding, packed, *, lang_to_idx, max_seq,
                    d_model, num_heads, start_tok, end_tok, pad_tok):
    tokens = batch_tokenize(sentences, lang_to_idx, max_seq,
                            start_tok, end_tok, pad_tok)
    # embedding gather + positional encoding (glue, plain JAX); dropout = identity
    x = embedding[tokens] + positional_encoding(d_model, max_seq)[None, :, :]
    x = x.astype(jnp.float32)
    out = encoder_stack(x, mask, packed, num_heads=num_heads)
    return out, tokens


# ---------------------------------------------------------------------------
# Main
# ---------------------------------------------------------------------------
if __name__ == "__main__":
    # small but lane-dense config (d_model multiple of 128 -> dense vregs/stores)
    d_model = 128
    ffn_hidden = 256
    num_heads = 4          # head_dim = 32
    num_layers = 2
    max_seq = 8
    batch = 2

    START, END, PAD = "<S>", "<E>", "<P>"
    vocab = list("abcdefghij") + [START, END, PAD]
    lang_to_idx = {tok: i for i, tok in enumerate(vocab)}
    vocab_size = len(vocab)

    key = jax.random.PRNGKey(0)
    k_emb, k_layers = jax.random.split(key, 2)
    layer_keys = jax.random.split(k_layers, num_layers)

    embedding = jax.random.normal(k_emb, (vocab_size, d_model), jnp.float32)
    layers = [init_layer_params(layer_keys[i], d_model, ffn_hidden)
              for i in range(num_layers)]
    packed = pack_params(layers, num_heads)

    sentences = ["abcd", "efghi"]  # lengths 4 and 5 -> +start +end, padded to 8

    # additive attention mask (B, S, S): 0 for valid keys, -1e9 for padding keys
    # (key-padding mask replicated over query rows; a full per-query mask can be
    # passed directly since the kernel takes (B, S, S)).
    tokens_preview = batch_tokenize(sentences, lang_to_idx, max_seq, START, END, PAD)
    pad_id = lang_to_idx[PAD]
    key_mask = jnp.where(tokens_preview != pad_id, 0.0, -1e9).astype(jnp.float32)
    mask = jnp.broadcast_to(key_mask[:, None, :], (batch, max_seq, max_seq))
    mask = jnp.asarray(mask, dtype=jnp.float32)

    out, tokens = encoder_forward(
        sentences, mask, embedding, packed,
        lang_to_idx=lang_to_idx, max_seq=max_seq, d_model=d_model,
        num_heads=num_heads, start_tok=START, end_tok=END, pad_tok=PAD)
    out = jax.block_until_ready(out)

    assert out.shape == (batch, max_seq, d_model)
    assert bool(jnp.all(jnp.isfinite(out)))
    print("KERNEL_OK")
</pallas_src>

<mosaic_0001>
module attributes {stable_mosaic.version = 11 : i64} {
  func.func @encoder_stack_kernel(%arg0: i32, %arg1: i32, %arg2: memref<1x8x128xf32, #tpu.memory_space<vmem>>, %arg3: memref<1x8x8xf32, #tpu.memory_space<vmem>>, %arg4: memref<1x4x128x32xbf16, #tpu.memory_space<vmem>>, %arg5: memref<1x4x1x32xf32, #tpu.memory_space<vmem>>, %arg6: memref<1x256x128xbf16, #tpu.memory_space<vmem>>, %arg7: memref<1x256x1xf32, #tpu.memory_space<vmem>>, %arg8: memref<1x128x128xbf16, #tpu.memory_space<vmem>>, %arg9: memref<1x1x128xf32, #tpu.memory_space<vmem>>, %arg10: memref<1x1x128xf32, #tpu.memory_space<vmem>>, %arg11: memref<1x1x128xf32, #tpu.memory_space<vmem>>, %arg12: memref<1x128x256xbf16, #tpu.memory_space<vmem>>, %arg13: memref<1x1x256xf32, #tpu.memory_space<vmem>>, %arg14: memref<1x256x128xbf16, #tpu.memory_space<vmem>>, %arg15: memref<1x1x128xf32, #tpu.memory_space<vmem>>, %arg16: memref<1x1x128xf32, #tpu.memory_space<vmem>>, %arg17: memref<1x1x128xf32, #tpu.memory_space<vmem>>, %arg18: memref<1x8x128xf32, #tpu.memory_space<vmem>>) attributes {dimension_semantics = [#tpu.dimension_semantics<parallel>, #tpu.dimension_semantics<arbitrary>], iteration_bounds = array<i64: 2, 2>, scalar_prefetch = 0 : i64, scratch_operands = 0 : i64, tpu.core_type = #tpu.core_type<tc>, window_params = [{transform_indices = @transform_0, window_bounds = array<i64: 1, 8, 128>}, {transform_indices = @transform_1, window_bounds = array<i64: 1, 8, 8>}, {transform_indices = @transform_2, window_bounds = array<i64: 1, 4, 128, 32>}, {transform_indices = @transform_3, window_bounds = array<i64: 1, 4, 1, 32>}, {transform_indices = @transform_4, window_bounds = array<i64: 1, 256, 128>}, {transform_indices = @transform_5, window_bounds = array<i64: 1, 256, 1>}, {transform_indices = @transform_6, window_bounds = array<i64: 1, 128, 128>}, {transform_indices = @transform_7, window_bounds = array<i64: 1, 1, 128>}, {transform_indices = @transform_8, window_bounds = array<i64: 1, 1, 128>}, {transform_indices = @transform_9, window_bounds = array<i64: 1, 1, 128>}, {transform_indices = @transform_10, window_bounds = array<i64: 1, 128, 256>}, {transform_indices = @transform_11, window_bounds = array<i64: 1, 1, 256>}, {transform_indices = @transform_12, window_bounds = array<i64: 1, 256, 128>}, {transform_indices = @transform_13, window_bounds = array<i64: 1, 1, 128>}, {transform_indices = @transform_14, window_bounds = array<i64: 1, 1, 128>}, {transform_indices = @transform_15, window_bounds = array<i64: 1, 1, 128>}, {transform_indices = @transform_16, window_bounds = array<i64: 1, 8, 128>}]} {
    %c0_i32 = arith.constant 0 : i32
    %0 = arith.cmpi eq, %arg1, %c0_i32 : i32
    %1 = arith.extui %0 : i1 to i32
    %c0_i32_0 = arith.constant 0 : i32
    %2 = arith.cmpi ne, %1, %c0_i32_0 : i32
    scf.if %2 {
      %c0_72 = arith.constant 0 : index
      %c0_73 = arith.constant 0 : index
      %c0_74 = arith.constant 0 : index
      %134 = vector.load %arg2[%c0_72, %c0_73, %c0_74] : memref<1x8x128xf32, #tpu.memory_space<vmem>>, vector<1x8x128xf32>
      %c0_75 = arith.constant 0 : index
      %c0_76 = arith.constant 0 : index
      %c0_77 = arith.constant 0 : index
      %135 = vector.load %arg18[%c0_75, %c0_76, %c0_77] : memref<1x8x128xf32, #tpu.memory_space<vmem>>, vector<1x8x128xf32>
      tpu.vector_store %arg18[%c0_75, %c0_76, %c0_77], %134 {strides = array<i32>} : memref<1x8x128xf32, #tpu.memory_space<vmem>>, vector<1x8x128xf32>,
    } else {
    }
    %c0 = arith.constant 0 : index
    %c0_1 = arith.constant 0 : index
    %c0_2 = arith.constant 0 : index
    %3 = vector.load %arg18[%c0, %c0_1, %c0_2] : memref<1x8x128xf32, #tpu.memory_space<vmem>>, vector<1x8x128xf32>
    %4 = vector.shape_cast %3 : vector<1x8x128xf32> to vector<8x128xf32>
    %5 = arith.truncf %4 : vector<8x128xf32> to vector<8x128xbf16>
    %c0_3 = arith.constant 0 : index
    %c0_4 = arith.constant 0 : index
    %c0_5 = arith.constant 0 : index
    %6 = vector.load %arg3[%c0_3, %c0_4, %c0_5] : memref<1x8x8xf32, #tpu.memory_space<vmem>>, vector<1x8x8xf32>
    %7 = vector.shape_cast %6 : vector<1x8x8xf32> to vector<8x8xf32>
    %8 = vector.shape_cast %5 : vector<8x128xbf16> to vector<1x8x128xbf16>
    %9 = vector.shape_cast %8 : vector<1x8x128xbf16> to vector<1x8x128xbf16>
    %10 = vector.broadcast %9 : vector<1x8x128xbf16> to vector<4x8x128xbf16>
    %c0_6 = arith.constant 0 : index
    %c0_7 = arith.constant 0 : index
    %c0_8 = arith.constant 0 : index
    %c0_9 = arith.constant 0 : index
    %11 = vector.load %arg4[%c0_6, %c0_7, %c0_8, %c0_9] : memref<1x4x128x32xbf16, #tpu.memory_space<vmem>>, vector<1x4x128x32xbf16>
    %12 = vector.shape_cast %11 : vector<1x4x128x32xbf16> to vector<4x128x32xbf16>
    "tpu.trace_start"() <{level = 10 : i32, message = "hsD,hDd->hsd"}> : () -> ()
    %cst = arith.constant dense<0.000000e+00> : vector<4x8x32xf32>
    %13 = tpu.matmul %10, %12, %cst {dimension_numbers = #tpu.dot_dimension_numbers<[2], [1], [1], [2], [0, 0, 0, 1, 1, 2], [0], [0]>} : vector<4x8x128xbf16>, vector<4x128x32xbf16>, vector<4x8x32xf32> -> vector<4x8x32xf32>
    "tpu.trace_stop"() : () -> ()
    %c0_10 = arith.constant 0 : index
    %c0_11 = arith.constant 0 : index
    %c0_12 = arith.constant 0 : index
    %c0_13 = arith.constant 0 : index
    %14 = vector.load %arg5[%c0_10, %c0_11, %c0_12, %c0_13] : memref<1x4x1x32xf32, #tpu.memory_space<vmem>>, vector<1x4x1x32xf32>
    %15 = vector.shape_cast %14 : vector<1x4x1x32xf32> to vector<4x1x32xf32>
    %16 = vector.broadcast %15 : vector<4x1x32xf32> to vector<4x8x32xf32>
    %17 = arith.addf %13, %16 : vector<4x8x32xf32>
    %18 = tpu.transpose %4, [1, 0] : vector<8x128xf32> -> vector<128x8xf32>
    %19 = arith.truncf %18 : vector<128x8xf32> to vector<128x8xbf16>
    %c0_14 = arith.constant 0 : index
    %c0_15 = arith.constant 0 : index
    %c0_16 = arith.constant 0 : index
    %20 = vector.load %arg6[%c0_14, %c0_15, %c0_16] : memref<1x256x128xbf16, #tpu.memory_space<vmem>>, vector<1x256x128xbf16>
    %21 = vector.shape_cast %20 : vector<1x256x128xbf16> to vector<256x128xbf16>
    %cst_17 = arith.constant dense<0.000000e+00> : vector<256x8xf32>
    %22 = tpu.matmul %21, %19, %cst_17 {dimension_numbers = #tpu.dot_dimension_numbers<[1], [0], [0], [1], [0, 0, 1, 1], [], []>} : vector<256x128xbf16>, vector<128x8xbf16>, vector<256x8xf32> -> vector<256x8xf32>
    %c0_18 = arith.constant 0 : index
    %c0_19 = arith.constant 0 : index
    %c0_20 = arith.constant 0 : index
    %23 = vector.load %arg7[%c0_18, %c0_19, %c0_20] : memref<1x256x1xf32, #tpu.memory_space<vmem>>, vector<1x256x1xf32>
    %24 = vector.shape_cast %23 : vector<1x256x1xf32> to vector<256x1xf32>
    %25 = vector.broadcast %24 : vector<256x1xf32> to vector<256x8xf32>
    %26 = arith.addf %22, %25 : vector<256x8xf32>
    %27 = vector.extract_strided_slice %26 {offsets = [0, 0], sizes = [128, 8], strides = [1, 1]} : vector<256x8xf32> to vector<128x8xf32>
    %28 = vector.shape_cast %27 : vector<128x8xf32> to vector<4x32x8xf32>
    %29 = arith.truncf %28 : vector<4x32x8xf32> to vector<4x32x8xbf16>
    %30 = vector.extract_strided_slice %26 {offsets = [128, 0], sizes = [128, 8], strides = [1, 1]} : vector<256x8xf32> to vector<128x8xf32>
    %31 = vector.shape_cast %30 : vector<128x8xf32> to vector<4x32x8xf32>
    %32 = arith.truncf %31 : vector<4x32x8xf32> to vector<4x32x8xbf16>
    %33 = arith.truncf %17 : vector<4x8x32xf32> to vector<4x8x32xbf16>
    "tpu.trace_start"() <{level = 10 : i32, message = "hqd,hdk->hqk"}> : () -> ()
    %cst_21 = arith.constant dense<0.000000e+00> : vector<4x8x8xf32>
    %34 = tpu.matmul %33, %29, %cst_21 {dimension_numbers = #tpu.dot_dimension_numbers<[2], [1], [1], [2], [0, 0, 0, 1, 1, 2], [0], [0]>} : vector<4x8x32xbf16>, vector<4x32x8xbf16>, vector<4x8x8xf32> -> vector<4x8x8xf32>
    "tpu.trace_stop"() : () -> ()
    %35 = vector.shape_cast %7 : vector<8x8xf32> to vector<1x8x8xf32>
    %36 = vector.broadcast %35 : vector<1x8x8xf32> to vector<4x8x8xf32>
    %37 = arith.addf %34, %36 : vector<4x8x8xf32>
    %cst_22 = arith.constant dense<0xFF800000> : vector<4x8xf32>
    %38 = vector.multi_reduction <maximumf>, %37, %cst_22 [2] : vector<4x8x8xf32> to vector<4x8xf32>
    %39 = vector.shape_cast %38 : vector<4x8xf32> to vector<4x8x1xf32>
    %40 = vector.broadcast %39 : vector<4x8x1xf32> to vector<4x8x8xf32>
    %41 = arith.subf %37, %40 : vector<4x8x8xf32>
    %42 = math.exp %41 : vector<4x8x8xf32>
    %cst_23 = arith.constant dense<0.000000e+00> : vector<4x8xf32>
    %43 = vector.multi_reduction <add>, %42, %cst_23 [2] : vector<4x8x8xf32> to vector<4x8xf32>
    %44 = vector.shape_cast %43 : vector<4x8xf32> to vector<4x8x1xf32>
    %45 = tpu.reciprocal %44 {approx = true} : vector<4x8x1xf32> -> vector<4x8x1xf32>
    %46 = vector.broadcast %45 : vector<4x8x1xf32> to vector<4x8x8xf32>
    %47 = arith.mulf %42, %46 : vector<4x8x8xf32>
    %48 = arith.truncf %47 : vector<4x8x8xf32> to vector<4x8x8xbf16>
    "tpu.trace_start"() <{level = 10 : i32, message = "hdk,hqk->hdq"}> : () -> ()
    %cst_24 = arith.constant dense<0.000000e+00> : vector<4x32x8xf32>
    %49 = tpu.matmul %32, %48, %cst_24 {dimension_numbers = #tpu.dot_dimension_numbers<[2], [2], [1], [1], [0, 0, 0, 1, 1, 1], [0], [0]>} : vector<4x32x8xbf16>, vector<4x8x8xbf16>, vector<4x32x8xf32> -> vector<4x32x8xf32>
    "tpu.trace_stop"() : () -> ()
    %50 = vector.shape_cast %49 : vector<4x32x8xf32> to vector<128x8xf32>
    %51 = tpu.transpose %50, [1, 0] : vector<128x8xf32> -> vector<8x128xf32>
    %52 = arith.truncf %51 : vector<8x128xf32> to vector<8x128xbf16>
    %c0_25 = arith.constant 0 : index
    %c0_26 = arith.constant 0 : index
    %c0_27 = arith.constant 0 : index
    %53 = vector.load %arg8[%c0_25, %c0_26, %c0_27] : memref<1x128x128xbf16, #tpu.memory_space<vmem>>, vector<1x128x128xbf16>
    %54 = vector.shape_cast %53 : vector<1x128x128xbf16> to vector<128x128xbf16>
    %cst_28 = arith.constant dense<0.000000e+00> : vector<8x128xf32>
    %55 = tpu.matmul %52, %54, %cst_28 {dimension_numbers = #tpu.dot_dimension_numbers<[1], [0], [0], [1], [0, 0, 1, 1], [], []>} : vector<8x128xbf16>, vector<128x128xbf16>, vector<8x128xf32> -> vector<8x128xf32>
    %c0_29 = arith.constant 0 : index
    %c0_30 = arith.constant 0 : index
    %c0_31 = arith.constant 0 : index
    %56 = vector.load %arg9[%c0_29, %c0_30, %c0_31] : memref<1x1x128xf32, #tpu.memory_space<vmem>>, vector<1x1x128xf32>
    %57 = vector.shape_cast %56 : vector<1x1x128xf32> to vector<1x128xf32>
    %58 = vector.broadcast %57 : vector<1x128xf32> to vector<8x128xf32>
    %59 = arith.addf %55, %58 : vector<8x128xf32>
    %60 = arith.addf %59, %4 : vector<8x128xf32>
    %c0_32 = arith.constant 0 : index
    %c0_33 = arith.constant 0 : index
    %c0_34 = arith.constant 0 : index
    %61 = vector.load %arg10[%c0_32, %c0_33, %c0_34] : memref<1x1x128xf32, #tpu.memory_space<vmem>>, vector<1x1x128xf32>
    %62 = vector.shape_cast %61 : vector<1x1x128xf32> to vector<1x128xf32>
    %c0_35 = arith.constant 0 : index
    %c0_36 = arith.constant 0 : index
    %c0_37 = arith.constant 0 : index
    %63 = vector.load %arg11[%c0_35, %c0_36, %c0_37] : memref<1x1x128xf32, #tpu.memory_space<vmem>>, vector<1x1x128xf32>
    %64 = vector.shape_cast %63 : vector<1x1x128xf32> to vector<1x128xf32>
    %cst_38 = arith.constant dense<0.000000e+00> : vector<8xf32>
    %65 = vector.multi_reduction <add>, %60, %cst_38 [1] : vector<8x128xf32> to vector<8xf32>
    %66 = vector.shape_cast %65 : vector<8xf32> to vector<8x1xf32>
    %cst_39 = arith.constant 1.280000e+02 : f32
    %67 = vector.broadcast %cst_39 : f32 to vector<8x1xf32>
    %68 = arith.divf %66, %67 : vector<8x1xf32>
    %69 = vector.broadcast %68 : vector<8x1xf32> to vector<8x128xf32>
    %70 = arith.subf %60, %69 : vector<8x128xf32>
    %71 = arith.mulf %70, %70 : vector<8x128xf32>
    %cst_40 = arith.constant dense<0.000000e+00> : vector<8xf32>
    %72 = vector.multi_reduction <add>, %71, %cst_40 [1] : vector<8x128xf32> to vector<8xf32>
    %73 = vector.shape_cast %72 : vector<8xf32> to vector<8x1xf32>
    %cst_41 = arith.constant 1.280000e+02 : f32
    %74 = vector.broadcast %cst_41 : f32 to vector<8x1xf32>
    %75 = arith.divf %73, %74 : vector<8x1xf32>
    %76 = vector.broadcast %68 : vector<8x1xf32> to vector<8x128xf32>
    %77 = arith.subf %60, %76 : vector<8x128xf32>
    %cst_42 = arith.constant 9.99999974E-6 : f32
    %78 = vector.broadcast %cst_42 : f32 to vector<8x1xf32>
    %79 = arith.addf %75, %78 : vector<8x1xf32>
    %80 = math.rsqrt %79 : vector<8x1xf32>
    %81 = vector.broadcast %80 : vector<8x1xf32> to vector<8x128xf32>
    %82 = arith.mulf %77, %81 : vector<8x128xf32>
    %83 = vector.broadcast %62 : vector<1x128xf32> to vector<8x128xf32>
    %84 = arith.mulf %83, %82 : vector<8x128xf32>
    %85 = vector.broadcast %64 : vector<1x128xf32> to vector<8x128xf32>
    %86 = arith.addf %84, %85 : vector<8x128xf32>
    %87 = arith.truncf %86 : vector<8x128xf32> to vector<8x128xbf16>
    %c0_43 = arith.constant 0 : index
    %c0_44 = arith.constant 0 : index
    %c0_45 = arith.constant 0 : index
    %88 = vector.load %arg12[%c0_43, %c0_44, %c0_45] : memref<1x128x256xbf16, #tpu.memory_space<vmem>>, vector<1x128x256xbf16>
    %89 = vector.shape_cast %88 : vector<1x128x256xbf16> to vector<128x256xbf16>
    %cst_46 = arith.constant dense<0.000000e+00> : vector<8x256xf32>
    %90 = tpu.matmul %87, %89, %cst_46 {dimension_numbers = #tpu.dot_dimension_numbers<[1], [0], [0], [1], [0, 0, 1, 1], [], []>} : vector<8x128xbf16>, vector<128x256xbf16>, vector<8x256xf32> -> vector<8x256xf32>
    %c0_47 = arith.constant 0 : index
    %c0_48 = arith.constant 0 : index
    %c0_49 = arith.constant 0 : index
    %91 = vector.load %arg13[%c0_47, %c0_48, %c0_49] : memref<1x1x256xf32, #tpu.memory_space<vmem>>, vector<1x1x256xf32>
    %92 = vector.shape_cast %91 : vector<1x1x256xf32> to vector<1x256xf32>
    %93 = vector.broadcast %92 : vector<1x256xf32> to vector<8x256xf32>
    %94 = arith.addf %90, %93 : vector<8x256xf32>
    %cst_50 = arith.constant 0.000000e+00 : f32
    %95 = vector.broadcast %cst_50 : f32 to vector<8x256xf32>
    %96 = arith.maximumf %94, %95 : vector<8x256xf32>
    %97 = arith.truncf %96 : vector<8x256xf32> to vector<8x256xbf16>
    %c0_51 = arith.constant 0 : index
    %c0_52 = arith.constant 0 : index
    %c0_53 = arith.constant 0 : index
    %98 = vector.load %arg14[%c0_51, %c0_52, %c0_53] : memref<1x256x128xbf16, #tpu.memory_space<vmem>>, vector<1x256x128xbf16>
    %99 = vector.shape_cast %98 : vector<1x256x128xbf16> to vector<256x128xbf16>
    %cst_54 = arith.constant dense<0.000000e+00> : vector<8x128xf32>
    %100 = tpu.matmul %97, %99, %cst_54 {dimension_numbers = #tpu.dot_dimension_numbers<[1], [0], [0], [1], [0, 0, 1, 1], [], []>} : vector<8x256xbf16>, vector<256x128xbf16>, vector<8x128xf32> -> vector<8x128xf32>
    %c0_55 = arith.constant 0 : index
    %c0_56 = arith.constant 0 : index
    %c0_57 = arith.constant 0 : index
    %101 = vector.load %arg15[%c0_55, %c0_56, %c0_57] : memref<1x1x128xf32, #tpu.memory_space<vmem>>, vector<1x1x128xf32>
    %102 = vector.shape_cast %101 : vector<1x1x128xf32> to vector<1x128xf32>
    %103 = vector.broadcast %102 : vector<1x128xf32> to vector<8x128xf32>
    %104 = arith.addf %100, %103 : vector<8x128xf32>
    %105 = arith.addf %104, %86 : vector<8x128xf32>
    %c0_58 = arith.constant 0 : index
    %c0_59 = arith.constant 0 : index
    %c0_60 = arith.constant 0 : index
    %106 = vector.load %arg16[%c0_58, %c0_59, %c0_60] : memref<1x1x128xf32, #tpu.memory_space<vmem>>, vector<1x1x128xf32>
    %107 = vector.shape_cast %106 : vector<1x1x128xf32> to vector<1x128xf32>
    %c0_61 = arith.constant 0 : index
    %c0_62 = arith.constant 0 : index
    %c0_63 = arith.constant 0 : index
    %108 = vector.load %arg17[%c0_61, %c0_62, %c0_63] : memref<1x1x128xf32, #tpu.memory_space<vmem>>, vector<1x1x128xf32>
    %109 = vector.shape_cast %108 : vector<1x1x128xf32> to vector<1x128xf32>
    %cst_64 = arith.constant dense<0.000000e+00> : vector<8xf32>
    %110 = vector.multi_reduction <add>, %105, %cst_64 [1] : vector<8x128xf32> to vector<8xf32>
    %111 = vector.shape_cast %110 : vector<8xf32> to vector<8x1xf32>
    %cst_65 = arith.constant 1.280000e+02 : f32
    %112 = vector.broadcast %cst_65 : f32 to vector<8x1xf32>
    %113 = arith.divf %111, %112 : vector<8x1xf32>
    %114 = vector.broadcast %113 : vector<8x1xf32> to vector<8x128xf32>
    %115 = arith.subf %105, %114 : vector<8x128xf32>
    %116 = arith.mulf %115, %115 : vector<8x128xf32>
    %cst_66 = arith.constant dense<0.000000e+00> : vector<8xf32>
    %117 = vector.multi_reduction <add>, %116, %cst_66 [1] : vector<8x128xf32> to vector<8xf32>
    %118 = vector.shape_cast %117 : vector<8xf32> to vector<8x1xf32>
    %cst_67 = arith.constant 1.280000e+02 : f32
    %119 = vector.broadcast %cst_67 : f32 to vector<8x1xf32>
    %120 = arith.divf %118, %119 : vector<8x1xf32>
    %121 = vector.broadcast %113 : vector<8x1xf32> to vector<8x128xf32>
    %122 = arith.subf %105, %121 : vector<8x128xf32>
    %cst_68 = arith.constant 9.99999974E-6 : f32
    %123 = vector.broadcast %cst_68 : f32 to vector<8x1xf32>
    %124 = arith.addf %120, %123 : vector<8x1xf32>
    %125 = math.rsqrt %124 : vector<8x1xf32>
    %126 = vector.broadcast %125 : vector<8x1xf32> to vector<8x128xf32>
    %127 = arith.mulf %122, %126 : vector<8x128xf32>
    %128 = vector.broadcast %107 : vector<1x128xf32> to vector<8x128xf32>
    %129 = arith.mulf %128, %127 : vector<8x128xf32>
    %130 = vector.broadcast %109 : vector<1x128xf32> to vector<8x128xf32>
    %131 = arith.addf %129, %130 : vector<8x128xf32>
    %132 = vector.shape_cast %131 : vector<8x128xf32> to vector<1x8x128xf32>
    %c0_69 = arith.constant 0 : index
    %c0_70 = arith.constant 0 : index
    %c0_71 = arith.constant 0 : index
    %133 = vector.load %arg18[%c0_69, %c0_70, %c0_71] : memref<1x8x128xf32, #tpu.memory_space<vmem>>, vector<1x8x128xf32>
    tpu.vector_store %arg18[%c0_69, %c0_70, %c0_71], %132 {strides = array<i32>} : memref<1x8x128xf32, #tpu.memory_space<vmem>>, vector<1x8x128xf32>,
    return
  }
  func.func @transform_0(%arg0: i32, %arg1: i32) -> (i32, i32, i32) {
    %c0_i32 = arith.constant 0 : i32
    %c0_i32_0 = arith.constant 0 : i32
    %c0_i32_1 = arith.constant 0 : i32
    return %arg0, %c0_i32, %c0_i32_0 : i32, i32, i32
  }
  func.func @transform_1(%arg0: i32, %arg1: i32) -> (i32, i32, i32) {
    %c0_i32 = arith.constant 0 : i32
    %c0_i32_0 = arith.constant 0 : i32
    %c0_i32_1 = arith.constant 0 : i32
    return %arg0, %c0_i32, %c0_i32_0 : i32, i32, i32
  }
  func.func @transform_2(%arg0: i32, %arg1: i32) -> (i32, i32, i32, i32) {
    %c0_i32 = arith.constant 0 : i32
    %c0_i32_0 = arith.constant 0 : i32
    %c0_i32_1 = arith.constant 0 : i32
    %c0_i32_2 = arith.constant 0 : i32
    return %arg1, %c0_i32, %c0_i32_0, %c0_i32_1 : i32, i32, i32, i32
  }
  func.func @transform_3(%arg0: i32, %arg1: i32) -> (i32, i32, i32, i32) {
    %c0_i32 = arith.constant 0 : i32
    %c0_i32_0 = arith.constant 0 : i32
    %c0_i32_1 = arith.constant 0 : i32
    %c0_i32_2 = arith.constant 0 : i32
    return %arg1, %c0_i32, %c0_i32_0, %c0_i32_1 : i32, i32, i32, i32
  }
  func.func @transform_4(%arg0: i32, %arg1: i32) -> (i32, i32, i32) {
    %c0_i32 = arith.constant 0 : i32
    %c0_i32_0 = arith.constant 0 : i32
    %c0_i32_1 = arith.constant 0 : i32
    return %arg1, %c0_i32, %c0_i32_0 : i32, i32, i32
  }
  func.func @transform_5(%arg0: i32, %arg1: i32) -> (i32, i32, i32) {
    %c0_i32 = arith.constant 0 : i32
    %c0_i32_0 = arith.constant 0 : i32
    %c0_i32_1 = arith.constant 0 : i32
    return %arg1, %c0_i32, %c0_i32_0 : i32, i32, i32
  }
  func.func @transform_6(%arg0: i32, %arg1: i32) -> (i32, i32, i32) {
    %c0_i32 = arith.constant 0 : i32
    %c0_i32_0 = arith.constant 0 : i32
    %c0_i32_1 = arith.constant 0 : i32
    return %arg1, %c0_i32, %c0_i32_0 : i32, i32, i32
  }
  func.func @transform_7(%arg0: i32, %arg1: i32) -> (i32, i32, i32) {
    %c0_i32 = arith.constant 0 : i32
    %c0_i32_0 = arith.constant 0 : i32
    %c0_i32_1 = arith.constant 0 : i32
    return %arg1, %c0_i32, %c0_i32_0 : i32, i32, i32
  }
  func.func @transform_8(%arg0: i32, %arg1: i32) -> (i32, i32, i32) {
    %c0_i32 = arith.constant 0 : i32
    %c0_i32_0 = arith.constant 0 : i32
    %c0_i32_1 = arith.constant 0 : i32
    return %arg1, %c0_i32, %c0_i32_0 : i32, i32, i32
  }
  func.func @transform_9(%arg0: i32, %arg1: i32) -> (i32, i32, i32) {
    %c0_i32 = arith.constant 0 : i32
    %c0_i32_0 = arith.constant 0 : i32
    %c0_i32_1 = arith.constant 0 : i32
    return %arg1, %c0_i32, %c0_i32_0 : i32, i32, i32
  }
  func.func @transform_10(%arg0: i32, %arg1: i32) -> (i32, i32, i32) {
    %c0_i32 = arith.constant 0 : i32
    %c0_i32_0 = arith.constant 0 : i32
    %c0_i32_1 = arith.constant 0 : i32
    return %arg1, %c0_i32, %c0_i32_0 : i32, i32, i32
  }
  func.func @transform_11(%arg0: i32, %arg1: i32) -> (i32, i32, i32) {
    %c0_i32 = arith.constant 0 : i32
    %c0_i32_0 = arith.constant 0 : i32
    %c0_i32_1 = arith.constant 0 : i32
    return %arg1, %c0_i32, %c0_i32_0 : i32, i32, i32
  }
  func.func @transform_12(%arg0: i32, %arg1: i32) -> (i32, i32, i32) {
    %c0_i32 = arith.constant 0 : i32
    %c0_i32_0 = arith.constant 0 : i32
    %c0_i32_1 = arith.constant 0 : i32
    return %arg1, %c0_i32, %c0_i32_0 : i32, i32, i32
  }
  func.func @transform_13(%arg0: i32, %arg1: i32) -> (i32, i32, i32) {
    %c0_i32 = arith.constant 0 : i32
    %c0_i32_0 = arith.constant 0 : i32
    %c0_i32_1 = arith.constant 0 : i32
    return %arg1, %c0_i32, %c0_i32_0 : i32, i32, i32
  }
  func.func @transform_14(%arg0: i32, %arg1: i32) -> (i32, i32, i32) {
    %c0_i32 = arith.constant 0 : i32
    %c0_i32_0 = arith.constant 0 : i32
    %c0_i32_1 = arith.constant 0 : i32
    return %arg1, %c0_i32, %c0_i32_0 : i32, i32, i32
  }
  func.func @transform_15(%arg0: i32, %arg1: i32) -> (i32, i32, i32) {
    %c0_i32 = arith.constant 0 : i32
    %c0_i32_0 = arith.constant 0 : i32
    %c0_i32_1 = arith.constant 0 : i32
    return %arg1, %c0_i32, %c0_i32_0 : i32, i32, i32
  }
  func.func @transform_16(%arg0: i32, %arg1: i32) -> (i32, i32, i32) {
    %c0_i32 = arith.constant 0 : i32
    %c0_i32_0 = arith.constant 0 : i32
    %c0_i32_1 = arith.constant 0 : i32
    return %arg0, %c0_i32, %c0_i32_0 : i32, i32, i32
  }
}

</mosaic_0001>

<bundles_post_ra>
// kernel: encoder_stack.1
= control target key start
LH: loop header
LB: loop body
LE: loop exit
PB: predicated region body
PF: predicated region fallthrough
CT: control target
= control target key end

     0   :  { %s4542_s0 = inlined_call_operand.hbm [shape: f32[2,8,128], index: 0, kind: input, shape index: {}, may-alias: {0,16}]   ;;  %s4543_s1 = inlined_call_operand.vmem [shape: f32[2,8,8], index: 1, kind: input, shape index: {}]   ;;  %s4544_s2 = inlined_call_operand.vmem [shape: bf16[2,4,128,32], index: 2, kind: input, shape index: {}]   ;;  %s4545_s3 = inlined_call_operand.vmem [shape: f32[2,4,1,32], index: 3, kind: input, shape index: {}]   ;;  %s4546_s4 = inlined_call_operand.vmem [shape: bf16[2,256,128], index: 4, kind: input, shape index: {}]   ;;  %s4547_s5 = inlined_call_operand.vmem [shape: f32[2,256,1], index: 5, kind: input, shape index: {}]   ;;  %s4548_s6 = inlined_call_operand.vmem [shape: bf16[2,128,128], index: 6, kind: input, shape index: {}]   ;;  %s4549_s7 = inlined_call_operand.vmem [shape: f32[2,1,128], index: 7, kind: input, shape index: {}]   ;;  %s4550_s8 = inlined_call_operand.vmem [shape: f32[2,1,128], index: 8, kind: input, shape index: {}]   ;;  %s4551_s9 = inlined_call_operand.vmem [shape: f32[2,1,128], index: 9, kind: input, shape index: {}]   ;;  %s4552_s10 = inlined_call_operand.vmem [shape: bf16[2,128,256], index: 10, kind: input, shape index: {}]   ;;  %s4553_s11 = inlined_call_operand.vmem [shape: f32[2,1,256], index: 11, kind: input, shape index: {}]   ;;  %s4554_s12 = inlined_call_operand.vmem [shape: bf16[2,256,128], index: 12, kind: input, shape index: {}]   ;;  %s4555_s13 = inlined_call_operand.vmem [shape: f32[2,1,128], index: 13, kind: input, shape index: {}]   ;;  %s4556_s14 = inlined_call_operand.vmem [shape: f32[2,1,128], index: 14, kind: input, shape index: {}]   ;;  %s4557_s15 = inlined_call_operand.vmem [shape: f32[2,1,128], index: 15, kind: input, shape index: {}]   ;;  %s4558_s16 = inlined_call_operand.hbm [shape: f32[2,8,128], index: 16, kind: output, shape index: {}, may-alias: {0,16}]  }
   0x1   :  { %4578 = sst [smem:[#allocation22_spill]] %s4542_s0 }
   0x2   :  { %4579 = sst [smem:[#allocation23_spill]] %s4543_s1 }
   0x3   :  { %4580 = sst [smem:[#allocation24_spill]] %s4544_s2 }
   0x4   :  { %4581 = sst [smem:[#allocation25_spill]] %s4545_s3 }
   0x5   :  { %4582 = sst [smem:[#allocation26_spill]] %s4546_s4 }
   0x6   :  { %4583 = sst [smem:[#allocation27_spill]] %s4547_s5 }
   0x7   :  { %4584 = sst [smem:[#allocation28_spill]] %s4548_s6 }
   0x8   :  { %4585 = sst [smem:[#allocation29_spill]] %s4549_s7 }
   0x9   :  { %4586 = sst [smem:[#allocation30_spill]] %s4550_s8 }
   0xa   :  { %4587 = sst [smem:[#allocation31_spill]] %s4551_s9 }
   0xb   :  { %4588 = sst [smem:[#allocation32_spill]] %s4552_s10 }
   0xc   :  { %4589 = sst [smem:[#allocation33_spill]] %s4553_s11 }
   0xd   :  { %4590 = sst [smem:[#allocation34_spill]] %s4554_s12 }
   0xe   :  { %4591 = sst [smem:[#allocation35_spill]] %s4555_s13 }
   0xf   :  { %4592 = sst [smem:[#allocation36_spill]] %s4556_s14 }
  0x10   :  { %4593 = sst [smem:[#allocation37_spill]] %s4557_s15 }
  0x11   :  { %4594 = sst [smem:[#allocation38_spill]] %s4558_s16 }
  0x12   :  { %21 = vsyncpa [#allocation3], 0 }
  0x13   :  { %23 = vsyncpa [#allocation3 + $0x1], 0 }
  0x14   :  { %24 = vsyncpa [#allocation4], 0 }
  0x15   :  { %26 = vsyncpa [#allocation4 + $0x1], 0  ;;  %s3929_s21 = smov 0   ;;  %s3931_s22 = smov 0  }
  0x16   :  { %s3933_s23 = smov 0   ;;  %s3935_s24 = smov 0  }
  0x17   :  { %s3937_s25 = smov 0   ;;  %s3939_s26 = smov 0  }
  0x18   :  { %s3941_s27 = smov 0   ;;  %s3943_s28 = smov 0  }
  0x19 LB: > { %4595 = sst [smem:[#allocation8_spill]] %s3809_s21  ;;  %s3041_s29 = sadd.s32 4294967295, %s3837_s28   ;;  %s3837_s28 = sphi %s3943_s28, %s32_s28   ;;  %s3833_s27 = sphi %s3941_s27, %s4658_s27   ;;  %s3829_s26 = sphi %s3939_s26, %s4657_s26   ;;  %s3825_s25 = sphi %s3937_s25, %s4656_s25   ;;  %s3821_s24 = sphi %s3935_s24, %s4655_s24   ;;  %s3817_s23 = sphi %s3933_s23, %s4654_s23   ;;  %s3813_s22 = sphi %s3931_s22, %s4653_s22   ;;  %s3809_s21 = sphi %s3929_s21, %s4652_s21  }
  0x1a   : > { %4596 = sst [smem:[#allocation9_spill]] %s3813_s22  ;;  %s3042_s30 = sadd.s32 4294967294, %s3837_s28  }
  0x1b   : > { %4597 = sst [smem:[#allocation10_spill]] %s3817_s23  ;;  %s41_s0 = sadd.s32 1, %s3829_s26 }
  0x1c   : > { %4598 = sst [smem:[#allocation11_spill]] %s3825_s25  ;;  %s44_s17 = sadd.s32 1, %s3833_s27 }
  0x1d   : > { %4599 = sst [smem:[#allocation12_spill]] %s3829_s26  ;;  %p42_p0 = scmp.ge.s32.totalorder %s41_s0, 2 }
  0x1e   : > { %4600 = sst [smem:[#allocation13_spill]] %s3833_s27  ;;  %s51_s18 = sadd.s32 1, %s3817_s23 }
  0x1f   : > { %4601 = sst [smem:[#allocation14_spill]] %s3837_s28  ;;  %p58_p1 = scmp.ne.s32.totalorder %s3817_s23, %s3813_s22 }
  0x20   : > { %p59_p2 = scmp.eq.s32.totalorder %s3837_s28, 0  ;;  %s4660_s0 = smov (%p42_p0, %s41_s0), 0 }
  0x21   : > { %4602 = sst [smem:[#allocation15_spill]] %s4660_s0  ;;  %s4662_s17 = smov (!%p42_p0, %s44_s17), %s3833_s27 }
  0x22   : > { %p3980_p3 = por %p59_p2, %p58_p1  ;;  %p64_p4 = scmp.ne.s32.totalorder %s3813_s22, %s3809_s21 }
  0x23   : > { %p46_p5 = scmp.ge.s32.totalorder %s4662_s17, 2  ;;  %p65_p6 = scmp.eq.s32.totalorder %s3041_s29, 0 }
  0x24   : > { %p478_p7 = scmp.eq.s32.totalorder %s3041_s29, 3  ;;  %p484_p8 = scmp.eq.s32.totalorder %s3042_s30, 3 }
  0x25   : > { %s4664_s17 = smov (%p46_p5, %s4662_s17), 0  ;;  %p3988_p9 = por %p65_p6, %p64_p4 }
  0x26   : > { %4604 = sst [smem:[#allocation16_spill]] %s4664_s17  ;;  %p3992_p10 = por %p478_p7, %p58_p1 }
  0x27   : > { %s48_s26 = ssub.s32 %s3833_s27, %s4664_s17  ;;  %p3998_p11 = por %p484_p8, %p64_p4 }
  0x28   : > { %s4606_s0 = scalar_select %p3992_p10, 1, 0 }
  0x29   : > { %s4608_s21 = scalar_select %p3998_p11, 1, 0 }
  0x2a   : > { %4607 = sst [smem:[#allocation17_spill]] %s4606_s0  ;;  %p49_p12 = scmp.eq.s32.totalorder %s48_s26, 0 }
  0x2b   : > { %4609 = sst [smem:[#allocation18_spill]] %s4608_s21  ;;  %p3521_p13 = scmp.lt.s32.totalorder %s3837_s28, 4 }
  0x2c   : > { %s504_s29 = sand.u32 1, %s3817_s23   ;;  %s3046_s15 = sshll.u32 %s3833_s27, 7 }
  0x2d   : > { %s4005_s30 = scalar_select %p49_p12, %s3817_s23, %s51_s18  }
  0x2e   : > { %s3045_s16 = sshll.u32 %s504_s29, 3  ;;  %s4611_s11 = sld [smem:[#allocation22_spill]] }
  0x2f   : > { %4610 = sst [smem:[#allocation19_spill]] %s4005_s30  ;;  %s508_s17 = scalar_lea.vmem [#allocation2], %s3045_s16 }
  0x30   : > { %s515_s0 = sshll.u32 %s508_s17, 4  ;;  %p4017_p0 = pnand %p3521_p13, %p3980_p3  ;;  %s4013_s0 = int_to_ptr.vmem [resolvable:$true] %s515_s0 }
  0x31   : > { %s505_s13 = scalar_lea.sflag [#allocation3], %s504_s29 }
  0x32   : > { %p3711_p5 = pneg %p4017_p0 }
  0x34   : > { %s4011_s12 = scalar_lea.hbm %s4611_s11, %s3046_s15  ;;  %s3714_s17 = scalar_lea.hbm %s4611_s11, 256 }
  0x35   : > { %s3709_s14 = scalar_lea.hbm %s4011_s12, 128  ;;  %p3715_p3 = scmp.lt.u32.totalorder %s4011_s12, %s4611_s11 }
  0x36   : > { %p3710_p4 = scmp.ne.s32.totalorder %s4011_s12, %s3709_s14  ;;  %p3716_p8 = scmp.lt.u32.totalorder %s3714_s17, %s3709_s14 }
  0x37   : > { %p3718_p13 = scmp.lt.u32.totalorder %s3709_s14, %s4011_s12 }
  0x38   : > { %p3712_p6 = pnand %p3711_p5, %p3710_p4  ;;  %p3717_p12 = por %p3716_p8, %p3715_p3 }
  0x3a   : > { %p3713_p7 = pneg %p3712_p6  ;;  %p3719_p1 = por %p3718_p13, %p3717_p12 }
  0x3c   : > { %p3720_p2 = pnand %p3719_p1, %p3713_p7 }
  0x3e   : > { %3723 = shalt.err (!%p3720_p2)
}
  0x3f   : > { %s3724_s29 = scalar_lea.vmem %s4013_s0, 128  ;;  %s3839_s15 = smov [#allocation2]  }
  0x40   : > { %p3725_p4 = scmp.ne.s32.totalorder %s4013_s0, %s3724_s29  ;;  %s3729_s16 = sshll.u32 %s3839_s15, 4  ;;  %s3730_s16 = int_to_ptr.vmem [resolvable:$false] %s3729_s16 }
  0x41   : > { %s3731_s18 = scalar_lea.vmem %s3730_s16, 256  ;;  %p3732_p10 = scmp.lt.s32.totalorder %s4013_s0, %s3730_s16 }
  0x42   : > { %p3727_p6 = pnand %p3725_p4, %p3711_p5  ;;  %p3733_p3 = scmp.lt.s32.totalorder %s3731_s18, %s3724_s29 }
  0x44   : > { %p3728_p11 = pneg %p3727_p6  ;;  %p3734_p8 = por %p3733_p3, %p3732_p10 }
  0x46   : > { %p3735_p12 = pnand %p3734_p8, %p3728_p11 }
  0x48   : > { %3738 = shalt.err (!%p3735_p12)
}
  0x49   : > { %3516 = dma.hbm_to_vmem [thread:$0]  (!%p4017_p0), %s4011_s12, 128, %s4013_s0, %s505_s13  }
  0x4a   : > { %p4613_p1 = scmp.lt.s32.totalorder %s3837_s28, 5  ;;  %p4614_p2 = scmp.ge.s32.totalorder %s3837_s28, 1 }
  0x4c   : > { %p626_p5 = pnand %p4614_p2, %p4613_p1 }
  0x4e   : > { %629 = sbr.rel (%p626_p5) target bundleno = 2713 (0xa99), region = 84 }
  0x55   : > { %s4053_s14 = sand.u32 1, %s3813_s22  }
  0x56   : > { %s4567_s17 = sshll.u32 %s4053_s14, 3  ;;  %s632_s19 = scalar_lea.sflag [#allocation3], %s4053_s14 }
  0x57   : > { %s4059_s26 = scalar_lea.vmem [#allocation2], %s4567_s17 }
  0x58   : > { %3800 = dma.done.wait (%p3988_p9), %s632_s19, 128  }
  0x59   : > { %3802 = vsyncadd (%p3988_p9), %s632_s19, 4294967168  ;;  %p744_p10 = scmp.lt.s32.totalorder %s3825_s25, 1  ;;  %p748_p11 = scmp.lt.s32.totalorder %s3821_s24, 1 }
  0x5a   : > { %s4615_s1 = sld [smem:[#allocation23_spill]]  ;;  %s4616_s2 = sld [smem:[#allocation24_spill]] }
  0x5b   : > { %s745_s12 = scalar_select %p744_p10, %s3825_s25, 1 }
  0x5c   : > { %s4069_s0 = scalar_select %p748_p11, %s3821_s24, 1 }
  0x5d   : > { %s3050_s13 = sshll.u32 %s745_s12, 3  ;;  %s4617_s3 = sld [smem:[#allocation25_spill]] }
  0x5e   : > { %s3180_s16 = sshll.u32 %s4069_s0, 8  ;;  %s3053_s11 = sshll.u32 %s4069_s0, 2 }
  0x5f   : > { %s3181_s12 = sshll.u32 %s4069_s0, 7  ;;  %s4618_s4 = sld [smem:[#allocation26_spill]] }
  0x60   : > { %s4074_s15 = scalar_lea.vmem %s4615_s1, %s3050_s13  ;;  %s4080_s17 = scalar_lea.vmem %s4616_s2, %s3180_s16 }
  0x61   : > { %s4619_s5 = sld [smem:[#allocation27_spill]]  ;;  %s3183_s2 = sshll.u32 %s4069_s0, 6 }
  0x62   : > { %s4621_s6 = sld [smem:[#allocation28_spill]]  ;;  %s4625_s10 = sld [smem:[#allocation32_spill]] }
  0x63   : > { %s4086_s23 = scalar_lea.vmem %s4617_s3, %s3053_s11  ;;  %s3062_s21 = sshll.u32 %s4069_s0, 1 }
  0x64   : > { %s4627_s7 = sld [smem:[#allocation34_spill]]  ;;  %s4632_s27 = sshll.u32 %s4053_s14, 3 }
  0x65   : > { %s4092_s29 = scalar_lea.vmem %s4618_s4, %s3181_s12  ;;  %s4629_s4 = sld [smem:[#allocation35_spill]] }
  0x66   : > { %p3065_p9 = scmp.ne.s32.totalorder %s3821_s24, 0 }
  0x67   : > { %s4097_s19 = scalar_lea.vmem %s4619_s5, %s3180_s16  ;;  %s4630_s16 = sld [smem:[#allocation36_spill]]  ;;  %v809_v0 = vld [vmem:[%s4059_s26] sm:$0xff] (!%p3065_p9) }
  0x68   : > { %s4107_s3 = scalar_lea.vmem %s4621_s6, %s3183_s2  ;;  %s4120_s5 = scalar_lea.vmem %s4625_s10, %s3181_s12 }
  0x69   : > { %4622 = sst [smem:[#allocation20_spill]] %s4107_s3  ;;  %s4628_s6 = sld [smem:[#allocation33_spill]] }
  0x6a   : > { %4626 = sst [smem:[#allocation21_spill]] %s4120_s5  ;;  %s4126_s30 = scalar_lea.vmem %s4627_s7, %s3181_s12 }
  0x6b   : > { %s797_s13 = scalar_lea.vmem %s4629_s4, %s4069_s0  ;;  %s4631_s5 = sld [smem:[#allocation37_spill]] }
  0x6c   : > { %s4147_s7 = scalar_lea.vmem [#allocation5], %s4632_s27  ;;  %808 = sbr.rel (%p3065_p9) target bundleno = 115 (0x73), region = 92 }
  0x6d   : > { %s800_s18 = scalar_lea.vmem %s4630_s16, %s4069_s0  ;;  %810 = vst [vmem:[%s4147_s7] sm:$0xff] (!%p3065_p9), %v809_v0 }
  0x6f   : > { %s4131_s25 = scalar_lea.vmem %s4628_s6, %s3062_s21 }
  0x71   : > { %s803_s3 = scalar_lea.vmem %s4631_s5, %s4069_s0 }
  0x73 PF: > { %v3840_v2 = vmov 0.0   ;;  %v3592_v3 = vld [vmem:[%s4080_s17] sm:$0xff]   ;;  %vm3841_vm0 = vmmov 0   ;;  %v3593_v4 = vld [vmem:[%s4080_s17 + $0x8] sm:$0xff]   ;;  %v3594_v5 = vld [vmem:[%s4080_s17 + $0x10] sm:$0xff]   ;;  %v3842_v35 = vmov 0  }
  0x74   : > { %v811_v1 = vld [vmem:[%s4147_s7] sm:$0xff]  ;;  %3301 = vmatprep.subr.bf16.mxu0 %v3840_v2  ;;  %3317 = vmatprep.mubr.msk.bf16.mxu0 %vm3841_vm0, %v3840_v2  ;;  %v3595_v6 = vld [vmem:[%s4080_s17 + $0x18] sm:$0xff]   ;;  %v3598_v9 = vld [vmem:[%s4080_s17 + $0x30] sm:$0xff]   ;;  %vm1799_vm1 = vcmask 261120   ;;  %vm1972_vm2 = vcmask 64512   ;;  %s4633_s5 = sld [smem:[#allocation20_spill]] }
  0x75   : > { %1258 = vxpose.xlu0.b32.start.end [1/1] (short) %v811_v1, 128  ;;  %3321 = vmatprep.subr.bf16.mxu1 %v3840_v2  ;;  %v3596_v7 = vld [vmem:[%s4080_s17 + $0x20] sm:$0xff]   ;;  %v3597_v8 = vld [vmem:[%s4080_s17 + $0x28] sm:$0xff]   ;;  %v3599_v10 = vld [vmem:[%s4080_s17 + $0x38] sm:$0xff]   ;;  %v4175_v12 = vpack.c.bf16 %v811_v1, %v811_v1  ;;  %s4634_s6 = sld [smem:[#allocation21_spill]]  ;;  %s4635_s10 = sld [smem:[#allocation29_spill]] }
  0x76   : > { %3302 = vmatpush3.bf16.msra.mxu0 %v3592_v3  ;;  %3337 = vmatprep.mubr.msk.bf16.mxu1 %vm3841_vm0, %v3840_v2  ;;  %v3600_v11 = vld [vmem:[%s4080_s17 + $0x80] sm:$0xff]   ;;  %v3601_v13 = vld [vmem:[%s4080_s17 + $0x88] sm:$0xff]   ;;  %v3602_v14 = vld [vmem:[%s4080_s17 + $0x90] sm:$0xff]   ;;  %s4637_s26 = sld [smem:[#allocation30_spill]]  ;;  %s4643_s2 = sld [smem:[#allocation17_spill]] }
  0x77   : > { %3303 = vmatprep.subr.bf16.mxu0 %v3840_v2  ;;  %v3608_v15 = vld [vmem:[%s4080_s17 + $0x40] sm:$0xff]   ;;  %v3603_v16 = vld [vmem:[%s4080_s17 + $0x98] sm:$0xff]   ;;  %v3609_v17 = vld [vmem:[%s4080_s17 + $0x48] sm:$0xff]   ;;  %3591 = vset.pattern.permute.xlu1 %v3842_v35  ;;  %s4646_s9 = sld [smem:[#allocation38_spill]] }
  0x78   : > { %3322 = vmatpush3.bf16.msra.mxu1 %v3608_v15  ;;  %v3604_v18 = vld [vmem:[%s4080_s17 + $0xa0] sm:$0xff]   ;;  %v3610_v19 = vld [vmem:[%s4080_s17 + $0x50] sm:$0xff]   ;;  %v3605_v20 = vld [vmem:[%s4080_s17 + $0xa8] sm:$0xff]  }
  0x79   : > { %3323 = vmatprep.subr.bf16.mxu1 %v3840_v2  ;;  %v3611_v21 = vld [vmem:[%s4080_s17 + $0x58] sm:$0xff]   ;;  %v3606_v22 = vld [vmem:[%s4080_s17 + $0xb0] sm:$0xff]   ;;  %v3612_v23 = vld [vmem:[%s4080_s17 + $0x60] sm:$0xff]  }
  0x7a   : > { %3304 = vmatpush3.bf16.msra.mxu0 %v3593_v4  ;;  %v3607_v24 = vld [vmem:[%s4080_s17 + $0xb8] sm:$0xff]   ;;  %v3613_v25 = vld [vmem:[%s4080_s17 + $0x68] sm:$0xff]   ;;  %v3614_v26 = vld [vmem:[%s4080_s17 + $0x70] sm:$0xff]  }
  0x7b   : > { %3305 = vmatprep.subr.bf16.mxu0 %v3840_v2  ;;  %v3615_v27 = vld [vmem:[%s4080_s17 + $0x78] sm:$0xff]   ;;  %v3616_v28 = vld [vmem:[%s4092_s29] sm:$0xff]   ;;  %v3619_v30 = vld [vmem:[%s4080_s17 + $0xc8] sm:$0xff]  }
  0x7c   : > { %3324 = vmatpush3.bf16.msra.mxu1 %v3609_v17  ;;  %v3618_v29 = vld [vmem:[%s4080_s17 + $0xc0] sm:$0xff]   ;;  %v3622_v31 = vld [vmem:[%s4080_s17 + $0xd0] sm:$0xff]   ;;  %v3623_v32 = vld [vmem:[%s4080_s17 + $0xd8] sm:$0xff]   ;;  %p4647_p7 = scmp.ne.s32.totalorder %s4643_s2, 0 }
  0x7d   : > { %3325 = vmatprep.subr.bf16.mxu1 %v3840_v2  ;;  %v3626_v33 = vld [vmem:[%s4080_s17 + $0xe0] sm:$0xff]   ;;  %v1331_v34 = vld [vmem:[%s4097_s19 + $0x8] sm:$0xff]  ;;  %v1332_v37 = vld [vmem:[%s4097_s19 + $0x10] sm:$0xff] }
  0x7e   : > { %3306 = vmatpush3.bf16.msra.mxu0 %v3594_v5  ;;  %1369 = vperm.xlu1 %3591, %v1331_v34   ;;  %v3627_v36 = vld [vmem:[%s4080_s17 + $0xe8] sm:$0xff]   ;;  %v3630_v38 = vld [vmem:[%s4080_s17 + $0xf0] sm:$0xff]   ;;  %v1333_v39 = vld [vmem:[%s4097_s19 + $0x18] sm:$0xff] }
  0x7f   : > { %3307 = vmatprep.subr.bf16.mxu0 %v3840_v2  ;;  %v3631_v40 = vld [vmem:[%s4080_s17 + $0xf8] sm:$0xff]   ;;  %v1334_v41 = vld [vmem:[%s4097_s19 + $0x20] sm:$0xff]  ;;  %v1335_v42 = vld [vmem:[%s4097_s19 + $0x28] sm:$0xff] }
  0x80   : > { %3326 = vmatpush3.bf16.msra.mxu1 %v3610_v19  ;;  %v1330_v43 = vld [vmem:[%s4097_s19] sm:$0xff]  ;;  %v1336_v44 = vld [vmem:[%s4097_s19 + $0x30] sm:$0xff]  ;;  %v1337_v45 = vld [vmem:[%s4097_s19 + $0x38] sm:$0xff] }
  0x81   : > { %3327 = vmatprep.subr.bf16.mxu1 %v3840_v2  ;;  %v1338_v46 = vld [vmem:[%s4097_s19 + $0x40] sm:$0xff]  ;;  %v1339_v47 = vld [vmem:[%s4097_s19 + $0x48] sm:$0xff]  ;;  %v1340_v48 = vld [vmem:[%s4097_s19 + $0x50] sm:$0xff] }
  0x82   : > { %3308 = vmatpush3.bf16.msra.mxu0 %v3595_v6  ;;  %1374 = vperm.xlu1 %3591, %v1332_v37   ;;  %v1341_v49 = vld [vmem:[%s4097_s19 + $0x58] sm:$0xff]  ;;  %v1342_v51 = vld [vmem:[%s4097_s19 + $0x60] sm:$0xff]  ;;  %v1343_v54 = vld [vmem:[%s4097_s19 + $0x68] sm:$0xff] }
  0x83   : > { %3309 = vmatprep.subr.bf16.mxu0 %v3840_v2  ;;  %v1344_v56 = vld [vmem:[%s4097_s19 + $0x70] sm:$0xff]  ;;  %v1345_v59 = vld [vmem:[%s4097_s19 + $0x78] sm:$0xff]  ;;  %v1346_v61 = vld [vmem:[%s4097_s19 + $0x80] sm:$0xff] }
  0x84   : > { %3328 = vmatpush3.bf16.msra.mxu1 %v3611_v21  ;;  %v3620_v17 = vld [vmem:[%s4092_s29 + $0x10] sm:$0xff]   ;;  %v3624_v19 = vld [vmem:[%s4092_s29 + $0x20] sm:$0xff]  }
  0x85   : > { %3329 = vmatprep.subr.bf16.mxu1 %v3840_v2  ;;  %v3628_v21 = vld [vmem:[%s4092_s29 + $0x30] sm:$0xff]  }
  0x86   : > { %3310 = vmatpush3.bf16.msra.mxu0 %v3596_v7  ;;  %1379 = vperm.xlu1 %3591, %v1333_v39  }
  0x87   : > { %3311 = vmatprep.subr.bf16.mxu0 %v3840_v2 }
  0x88   : > { %3330 = vmatpush3.bf16.msra.mxu1 %v3612_v23  ;;  %v3632_v23 = vld [vmem:[%s4092_s29 + $0x40] sm:$0xff]  }
  0x89   : > { %3331 = vmatprep.subr.bf16.mxu1 %v3840_v2 }
  0x8a   : > { %3312 = vmatpush3.bf16.msra.mxu0 %v3597_v8  ;;  %1384 = vperm.xlu1 %3591, %v1334_v41  }
  0x8b   : > { %3313 = vmatprep.subr.bf16.mxu0 %v3840_v2 }
  0x8c   : > { %3332 = vmatpush3.bf16.msra.mxu1 %v3613_v25 }
  0x8d   : > { %3333 = vmatprep.subr.bf16.mxu1 %v3840_v2 }
  0x8e   : > { %3314 = vmatpush3.bf16.msra.mxu0 %v3598_v9  ;;  %1389 = vperm.xlu1 %3591, %v1335_v42   ;;  %v3634_v42 = vld [vmem:[%s4092_s29 + $0x50] sm:$0xff]  }
  0x8f   : > { %3315 = vmatprep.subr.bf16.mxu0 %v3840_v2 }
  0x90   : > { %3334 = vmatpush3.bf16.msra.mxu1 %v3614_v26 }
  0x91   : > { %3335 = vmatprep.subr.bf16.mxu1 %v3840_v2 }
  0x92   : > { %3316 = vmatpush3.bf16.msra.mxu0 %v3599_v10  ;;  %1394 = vperm.xlu1 %3591, %v1336_v44   ;;  %v3636_v44 = vld [vmem:[%s4092_s29 + $0x60] sm:$0xff]  }
  0x93   : > { %3341 = vmatprep.subr.bf16.mxu0 %v3840_v2 }
  0x94   : > { %3336 = vmatpush3.bf16.msra.mxu1 %v3615_v27 }
  0x95   : > { %3318 = vmatmul.mubr.bf16.vlgmr.msra.gmra.mrb[0].mxu0 %v4175_v12  ;;  %3361 = vmatprep.subr.bf16.mxu1 %v3840_v2 }
  0x96   : > { %3342 = vmatpush3.bf16.msra.mxu0 %v3600_v11  ;;  %3357 = vmatprep.mubr.msk.bf16.mxu0 %vm3841_vm0, %v3840_v2 }
  0x97   : > { %3343 = vmatprep.subr.bf16.mxu0 %v3840_v2  ;;  %3338 = vmatmul.mubr.bf16.vlgmr.msra.gmra.mrb[0].mxu1 %v4175_v12 }
  0x98   : > { %3362 = vmatpush3.bf16.msra.mxu1 %v3618_v29  ;;  %3377 = vmatprep.mubr.msk.bf16.mxu1 %vm3841_vm0, %v3840_v2 }
  0x99   : > { %3363 = vmatprep.subr.bf16.mxu1 %v3840_v2  ;;  %1399 = vperm.xlu1 %3591, %v1337_v45   ;;  %v3637_v45 = vld [vmem:[%s4092_s29 + $0x68] sm:$0xff]  }
  0x9a   : > { %3344 = vmatpush3.bf16.msra.mxu0 %v3601_v13 }
  0x9b   : > { %3345 = vmatprep.subr.bf16.mxu0 %v3840_v2 }
  0x9c   : > { %3364 = vmatpush3.bf16.msra.mxu1 %v3619_v30 }
  0x9d   : > { %3365 = vmatprep.subr.bf16.mxu1 %v3840_v2  ;;  %1404 = vperm.xlu1 %3591, %v1338_v46   ;;  %v3638_v46 = vld [vmem:[%s4092_s29 + $0x70] sm:$0xff]  }
  0x9e   : > { %3346 = vmatpush3.bf16.msra.mxu0 %v3602_v14  ;;  %3590 = vset.pattern.permute.xlu0 %v3842_v35 }
  0x9f   : > { %3347 = vmatprep.subr.bf16.mxu0 %v3840_v2 }
  0xa0   : > { %3366 = vmatpush3.bf16.msra.mxu1 %v3622_v31 }
  0xa1   : > { %3367 = vmatprep.subr.bf16.mxu1 %v3840_v2  ;;  %1409 = vperm.xlu1 %3591, %v1339_v47   ;;  %v3639_v47 = vld [vmem:[%s4092_s29 + $0x78] sm:$0xff]  }
  0xa2   : > { %3348 = vmatpush3.bf16.msra.mxu0 %v3603_v16  ;;  %v3617_v16 = vld [vmem:[%s4092_s29 + $0x8] sm:$0xff]  }
  0xa3   : > { %3349 = vmatprep.subr.bf16.mxu0 %v3840_v2 }
  0xa4   : > { %3368 = vmatpush3.bf16.msra.mxu1 %v3623_v32 }
  0xa5   : > { %3369 = vmatprep.subr.bf16.mxu1 %v3840_v2  ;;  %1414 = vperm.xlu1 %3591, %v1340_v48  }
  0xa6   : > { %3350 = vmatpush3.bf16.msra.mxu0 %v3604_v18  ;;  %v3621_v18 = vld [vmem:[%s4092_s29 + $0x18] sm:$0xff]  }
  0xa7   : > { %3351 = vmatprep.subr.bf16.mxu0 %v3840_v2 }
  0xa8   : > { %3370 = vmatpush3.bf16.msra.mxu1 %v3626_v33 }
  0xa9   : > { %3371 = vmatprep.subr.bf16.mxu1 %v3840_v2  ;;  %1419 = vperm.xlu1 %3591, %v1341_v49  }
  0xaa   : > { %3352 = vmatpush3.bf16.msra.mxu0 %v3605_v20  ;;  %v3625_v20 = vld [vmem:[%s4092_s29 + $0x28] sm:$0xff]  }
  0xab   : > { %3353 = vmatprep.subr.bf16.mxu0 %v3840_v2 }
  0xac   : > { %3372 = vmatpush3.bf16.msra.mxu1 %v3627_v36 }
  0xad   : > { %3373 = vmatprep.subr.bf16.mxu1 %v3840_v2  ;;  %1424 = vperm.xlu1 %3591, %v1342_v51  }
  0xae   : > { %3354 = vmatpush3.bf16.msra.mxu0 %v3606_v22  ;;  %v3629_v22 = vld [vmem:[%s4092_s29 + $0x38] sm:$0xff]  }
  0xaf   : > { %3355 = vmatprep.subr.bf16.mxu0 %v3840_v2 }
  0xb0   : > { %3374 = vmatpush3.bf16.msra.mxu1 %v3630_v38 }
  0xb1   : > { %3375 = vmatprep.subr.bf16.mxu1 %v3840_v2  ;;  %1429 = vperm.xlu1 %3591, %v1343_v54  }
  0xb2   : > { %3356 = vmatpush3.bf16.msra.mxu0 %v3607_v24  ;;  %v3633_v24 = vld [vmem:[%s4092_s29 + $0x48] sm:$0xff]  }
  0xb4   : > { %3376 = vmatpush3.bf16.msra.mxu1 %v3631_v40 }
  0xb5   : > { %3358 = vmatmul.mubr.bf16.vlgmr.msra.gmra.mrb[4].mxu0 %v4175_v12  ;;  %3429 = vmatprep.subr.bf16.mxu1 %v3840_v2 }
  0xb6   : > { %3397 = vmatprep.mubr.bf16.mxu0 %v3616_v28  ;;  %1434 = vperm.xlu1 %3591, %v1344_v56  }
  0xb7   : > { %3378 = vmatmul.mubr.bf16.vlgmr.msra.gmra.mrb[4].mxu1 %v4175_v12 }
  0xb8   : > { %3433 = vmatprep.mubr.msk.bf16.mxu1 %vm3841_vm0, %v3840_v2 }
  0xba   : > { %1439 = vperm.xlu1 %3591, %v1345_v59  }
  0xbe   : > { %1444 = vperm.xlu1 %3591, %v1346_v61  }
  0xda   : > { %1364 = vperm.xlu0 %3590, %v1330_v43   ;;  %v3635_v43 = vld [vmem:[%s4092_s29 + $0x58] sm:$0xff]  }
  0xf5   : > { %v1274_v50 = vpop.trf.xlu0 }
  0xf9   : > { %v1275_v52 = vpop.trf.xlu0 }
  0xfa   : > { %v1290_v53 = vpack.c.bf16 %v1275_v52, %v1274_v50 }
  0xfc   : > { %3381 = vmatprep.subr.bf16.mxu0 %v1290_v53 }
  0xfd   : > { %v1276_v55 = vpop.trf.xlu0  ;;  %3382 = vmatpush3.bf16.msra.mxu0 %v1290_v53  ;;  %v1370_v48 = vpop.permute.xlu1 %1369 }
 0x101   : > { %v1277_v57 = vpop.trf.xlu0  ;;  %v1375_v49 = vpop.permute.xlu1 %1374 }
 0x102   : > { %v1291_v58 = vpack.c.bf16 %v1277_v57, %v1276_v55 }
 0x104   : > { %3383 = vmatprep.subr.bf16.mxu0 %v1291_v58 }
 0x105   : > { %v1278_v60 = vpop.trf.xlu0  ;;  %3384 = vmatpush3.bf16.msra.mxu0 %v1291_v58  ;;  %v1380_v50 = vpop.permute.xlu1 %1379 }
 0x109   : > { %v1279_v62 = vpop.trf.xlu0  ;;  %v1385_v51 = vpop.permute.xlu1 %1384 }
 0x10a   : > { %v1292_v63 = vpack.c.bf16 %v1279_v62, %v1278_v60 }
 0x10c   : > { %3385 = vmatprep.subr.bf16.mxu0 %v1292_v63 }
 0x10d   : > { %v1280_v0 = vpop.trf.xlu0  ;;  %3386 = vmatpush3.bf16.msra.mxu0 %v1292_v63  ;;  %v1390_v52 = vpop.permute.xlu1 %1389 }
 0x111   : > { %v1281_v1 = vpop.trf.xlu0  ;;  %v1395_v53 = vpop.permute.xlu1 %1394 }
 0x112   : > { %v1293_v3 = vpack.c.bf16 %v1281_v1, %v1280_v0 }
 0x114   : > { %3387 = vmatprep.subr.bf16.mxu0 %v1293_v3 }
 0x115   : > { %v1282_v4 = vpop.trf.xlu0  ;;  %3388 = vmatpush3.bf16.msra.mxu0 %v1293_v3 }
 0x118   : > { %v1400_v54 = vpop.permute.xlu1 %1399 }
 0x119   : > { %v1283_v5 = vpop.trf.xlu0 }
 0x11a   : > { %v1294_v6 = vpack.c.bf16 %v1283_v5, %v1282_v4 }
 0x11c   : > { %3389 = vmatprep.subr.bf16.mxu0 %v1294_v6  ;;  %v1405_v55 = vpop.permute.xlu1 %1404 }
 0x11d   : > { %v1284_v7 = vpop.trf.xlu0  ;;  %3390 = vmatpush3.bf16.msra.mxu0 %v1294_v6  ;;  %v3066_v6 = vld [vmem:[%s4086_s23] ss:$0 sm:$0xff] }
 0x120   : > { %v1410_v56 = vpop.permute.xlu1 %1409 }
 0x121   : > { %v1285_v8 = vpop.trf.xlu0 }
 0x122   : > { %v1295_v9 = vpack.c.bf16 %v1285_v8, %v1284_v7 }
 0x124   : > { %3391 = vmatprep.subr.bf16.mxu0 %v1295_v9  ;;  %v1415_v57 = vpop.permute.xlu1 %1414 }
 0x125   : > { %v1286_v10 = vpop.trf.xlu0  ;;  %3392 = vmatpush3.bf16.msra.mxu0 %v1295_v9 }
 0x128   : > { %v1420_v61 = vpop.permute.xlu1 %1419 }
 0x129   : > { %v1287_v11 = vpop.trf.xlu0 }
 0x12a   : > { %v1296_v12 = vpack.c.bf16 %v1287_v11, %v1286_v10 }
 0x12c   : > { %3393 = vmatprep.subr.bf16.mxu0 %v1296_v12  ;;  %v1425_v8 = vpop.permute.xlu1 %1424 }
 0x12d   : > { %v1288_v13 = vpop.trf.xlu0  ;;  %3394 = vmatpush3.bf16.msra.mxu0 %v1296_v12 }
 0x131   : > { %v1289_v14 = vpop.trf.xlu0 }
 0x132   : > { %v1297_v15 = vpack.c.bf16 %v1289_v14, %v1288_v13 }
 0x134   : > { %3395 = vmatprep.subr.bf16.mxu0 %v1297_v15 }
 0x135   : > { %3396 = vmatpush3.bf16.msra.mxu0 %v1297_v15 }
 0x136   : > { %3485 = vmatprep.subr.bf16.mxu0 %v3840_v2 }
 0x138   : > { %3398 = vmatmul.mubr.bf16.vlgmr.msra.gmra.mrb[8].mxu0 %v3617_v16 }
 0x139   : > { %3401 = vmatprep.mubr.bf16.mxu0 %v3620_v17 }
 0x140   : > { %3402 = vmatmul.mubr.bf16.gmra.mrb[12].mxu0 %v3621_v18  ;;  %v3067_v18 = vld [vmem:[%s4086_s23 + $0x1] ss:$0 sm:$0xff] }
 0x141   : > { %3405 = vmatprep.mubr.bf16.mxu0 %v3624_v19 }
 0x148   : > { %3406 = vmatmul.mubr.bf16.gmra.mrb[16].mxu0 %v3625_v20 }
 0x149   : > { %3409 = vmatprep.mubr.bf16.mxu0 %v3628_v21  ;;  %v1430_v21 = vpop.permute.xlu1 %1429 }
 0x150   : > { %3410 = vmatmul.mubr.bf16.gmra.mrb[20].mxu0 %v3629_v22 }
 0x151   : > { %3413 = vmatprep.mubr.bf16.mxu0 %v3632_v23 }
 0x158   : > { %3414 = vmatmul.mubr.bf16.gmra.mrb[24].mxu0 %v3633_v24 }
 0x159   : > { %3417 = vmatprep.mubr.bf16.mxu0 %v3634_v42  ;;  %v1365_v59 = vpop.permute.xlu0 %1364 }
 0x160   : > { %3418 = vmatmul.mubr.bf16.gmra.mrb[28].mxu0 %v3635_v43 }
 0x161   : > { %3421 = vmatprep.mubr.bf16.mxu0 %v3636_v44 }
 0x168   : > { %v988_v25 = vpop.f32.mrb[0].mxu0  ;;  %3422 = vmatmul.mubr.bf16.gmra.mrb[32].mxu0 %v3637_v45 }
 0x169   : > { %v3319_v26 = vpop.f32.mrb[1].mxu0  ;;  %3425 = vmatprep.mubr.bf16.mxu0 %v3638_v46  ;;  %v989_v10 = vadd.f32 %v3066_v6, %v988_v25 }
 0x16a   : > { %v991_v27 = vpop.f32.mrb[2].mxu0  ;;  %v4266_v33 = vpop.f32.mrb[0].mxu1 }
 0x16b   : > { %v3320_v28 = vpop.f32.mrb[3].mxu0  ;;  %v3339_v34 = vpop.f32.mrb[1].mxu1  ;;  %v1795_v19 = vpack.c.bf16 %v989_v10, %v989_v10  ;;  %v1077_v23 = vadd.f32 %v3067_v18, %v4266_v33  ;;  %v3068_v33 = vld [vmem:[%s4086_s23 + $0x2] ss:$0 sm:$0xff]  ;;  %v1348_v18 = vld [vmem:[%s4097_s19 + $0x90] sm:$0xff] }
 0x16c   : > { %v1079_v36 = vpop.f32.mrb[2].mxu1 }
 0x16d   : > { %v3340_v37 = vpop.f32.mrb[3].mxu1  ;;  %v1796_v28 = vpack.c.bf16 %v1077_v23, %v1077_v23 }
 0x170   : > { %3426 = vmatmul.mubr.bf16.gmra.mrb[36].mxu0 %v3639_v47 }
 0x171   : > { %3501 = vmatprep.mubr.msk.bf16.mxu0 %vm3841_vm0, %v3840_v2 }
 0x188   : > { %v4264_v29 = vpop.f32.mrb[4].mxu0 }
 0x189   : > { %v3359_v30 = vpop.f32.mrb[5].mxu0 }
 0x18a   : > { %v1167_v31 = vpop.f32.mrb[6].mxu0  ;;  %v4268_v38 = vpop.f32.mrb[4].mxu1 }
 0x18b   : > { %v3360_v32 = vpop.f32.mrb[7].mxu0  ;;  %v3379_v39 = vpop.f32.mrb[5].mxu1 }
 0x18c   : > { %v1255_v40 = vpop.f32.mrb[6].mxu1  ;;  %v1435_v32 = vpop.permute.xlu1 %1434 }
 0x18d   : > { %v3380_v41 = vpop.f32.mrb[7].mxu1 }
 0x18e   : > { %v1165_v41 = vadd.f32 %v3068_v33, %v4264_v29  ;;  %v1357_v33 = vld [vmem:[%s4097_s19 + $0xd8] sm:$0xff] }
 0x190   : > { %v1440_v43 = vpop.permute.xlu1 %1439 }
 0x20b   : > { %v3399_v58 = vpop.f32.mrb[8].mxu0 }
 0x20c   : > { %v1652_v60 = vpop.f32.mrb[9].mxu0  ;;  %v1661_v63 = vadd.f32 %v3399_v58, %v1375_v49 }
 0x20d   : > { %v3400_v62 = vpop.f32.mrb[10].mxu0  ;;  %v1653_v3 = vadd.f32 %v1652_v60, %v1365_v59 }
 0x20e   : > { %v1664_v0 = vadd.f32 %v3400_v62, %v1380_v50  ;;  %v1655_v1 = vpop.f32.mrb[11].mxu0  ;;  %v3069_v50 = vld [vmem:[%s4086_s23 + $0x3] ss:$0 sm:$0xff]  ;;  %s4636_s23 = scalar_lea.vmem %s4635_s10, %s4069_s0 }
 0x20f   : > { %v1656_v4 = vadd.f32 %v1655_v1, %v1370_v48  ;;  %v1253_v29 = vadd.f32 %v3069_v50, %v4268_v38 }
 0x210   : > { %v1780_v5 = vpack.c.bf16 %v1664_v0, %v1661_v63 }
 0x211   : > { %v1779_v7 = vpack.c.bf16 %v1656_v4, %v1653_v3 }
 0x213   : > { %v3403_v9 = vpop.f32.mrb[12].mxu0  ;;  %3430 = vmatpush3.bf16.msra.mxu1 %v1779_v7 }
 0x214   : > { %v1668_v11 = vpop.f32.mrb[13].mxu0  ;;  %3431 = vmatprep.subr.bf16.mxu1 %v3840_v2  ;;  %v1677_v13 = vadd.f32 %v3403_v9, %v1395_v53 }
 0x215   : > { %v3404_v12 = vpop.f32.mrb[14].mxu0  ;;  %v1669_v16 = vadd.f32 %v1668_v11, %v1385_v51  ;;  %v1797_v51 = vpack.c.bf16 %v1165_v41, %v1165_v41 }
 0x216   : > { %v1680_v14 = vadd.f32 %v3404_v12, %v1400_v54  ;;  %v1671_v15 = vpop.f32.mrb[15].mxu0 }
 0x217   : > { %v1672_v17 = vadd.f32 %v1671_v15, %v1390_v52  ;;  %3432 = vmatpush3.bf16.msra.mxu1 %v1780_v5 }
 0x218   : > { %v1782_v20 = vpack.c.bf16 %v1680_v14, %v1677_v13  ;;  %3437 = vmatprep.subr.bf16.mxu1 %v3840_v2 }
 0x219   : > { %v1781_v22 = vpack.c.bf16 %v1672_v17, %v1669_v16 }
 0x21a   : > { %3434 = vmatmul.mubr.msk.bf16.vlgmr.msra.gmra.mrb[8].mxu1 %vm1799_vm1, %v1795_v19  ;;  %v1349_v19 = vld [vmem:[%s4097_s19 + $0x98] sm:$0xff] }
 0x21b   : > { %v3407_v24 = vpop.f32.mrb[16].mxu0  ;;  %3438 = vmatpush3.bf16.msra.mxu1 %v1781_v22  ;;  %3441 = vmatprep.mubr.msk.bf16.mxu1 %vm3841_vm0, %v3840_v2 }
 0x21c   : > { %v1684_v25 = vpop.f32.mrb[17].mxu0  ;;  %3439 = vmatprep.subr.bf16.mxu1 %v3840_v2  ;;  %v1693_v27 = vadd.f32 %v3407_v24, %v1415_v57  ;;  %v813_v57 = vld [vmem:[%s4074_s15] sm:$0xff]  ;;  %s4638_s15 = scalar_lea.vmem %s4637_s26, %s4069_s0 }
 0x21d   : > { %v3408_v26 = vpop.f32.mrb[18].mxu0  ;;  %v1685_v34 = vadd.f32 %v1684_v25, %v1405_v55  ;;  %v1351_v25 = vld [vmem:[%s4097_s19 + $0xa8] sm:$0xff] }
 0x21e   : > { %v1696_v30 = vadd.f32 %v3408_v26, %v1420_v61  ;;  %v1687_v31 = vpop.f32.mrb[19].mxu0 }
 0x21f   : > { %v1688_v36 = vadd.f32 %v1687_v31, %v1410_v56  ;;  %3440 = vmatpush3.bf16.msra.mxu1 %v1782_v20  ;;  %v1798_v56 = vpack.c.bf16 %v1253_v29, %v1253_v29  ;;  %v1355_v31 = vld [vmem:[%s4097_s19 + $0xc8] sm:$0xff] }
 0x220   : > { %v1784_v37 = vpack.c.bf16 %v1696_v30, %v1693_v27  ;;  %3445 = vmatprep.subr.bf16.mxu1 %v3840_v2  ;;  %v1353_v30 = vld [vmem:[%s4097_s19 + $0xb8] sm:$0xff] }
 0x221   : > { %v1783_v39 = vpack.c.bf16 %v1688_v36, %v1685_v34 }
 0x222   : > { %3442 = vmatmul.mubr.msk.bf16.vlgmr.msra.gmra.mrb[12].mxu1 %vm1799_vm1, %v1796_v28  ;;  %v1352_v28 = vld [vmem:[%s4097_s19 + $0xb0] sm:$0xff] }
 0x223   : > { %v3411_v40 = vpop.f32.mrb[20].mxu0  ;;  %3446 = vmatpush3.bf16.msra.mxu1 %v1783_v39  ;;  %3449 = vmatprep.mubr.msk.bf16.mxu1 %vm3841_vm0, %v3840_v2  ;;  %v1359_v39 = vld [vmem:[%s4097_s19 + $0xe8] sm:$0xff] }
 0x224   : > { %v1700_v42 = vpop.f32.mrb[21].mxu0  ;;  %3447 = vmatprep.subr.bf16.mxu1 %v3840_v2  ;;  %v1709_v45 = vadd.f32 %v3411_v40, %v1435_v32 }
 0x225   : > { %v3412_v44 = vpop.f32.mrb[22].mxu0  ;;  %v1701_v48 = vadd.f32 %v1700_v42, %v1425_v8 }
 0x226   : > { %v1712_v46 = vadd.f32 %v3412_v44, %v1440_v43  ;;  %v1703_v47 = vpop.f32.mrb[23].mxu0  ;;  %v4342_v44 = vpop.permute.xlu1 %1444 }
 0x227   : > { %v1704_v49 = vadd.f32 %v1703_v47, %v1430_v21  ;;  %3448 = vmatpush3.bf16.msra.mxu1 %v1784_v37  ;;  %v1350_v21 = vld [vmem:[%s4097_s19 + $0xa0] sm:$0xff] }
 0x228   : > { %v1786_v52 = vpack.c.bf16 %v1712_v46, %v1709_v45  ;;  %3453 = vmatprep.subr.bf16.mxu1 %v3840_v2 }
 0x229   : > { %v1785_v53 = vpack.c.bf16 %v1704_v49, %v1701_v48 }
 0x22a   : > { %3450 = vmatmul.mubr.msk.bf16.vlgmr.msra.gmra.mrb[16].mxu1 %vm1799_vm1, %v1797_v51 }
 0x22b   : > { %v4298_v54 = vpop.f32.mrb[24].mxu0  ;;  %3454 = vmatpush3.bf16.msra.mxu1 %v1785_v53  ;;  %3457 = vmatprep.mubr.msk.bf16.mxu1 %vm3841_vm0, %v3840_v2 }
 0x22c   : > { %v4302_v55 = vpop.f32.mrb[25].mxu0  ;;  %3455 = vmatprep.subr.bf16.mxu1 %v3840_v2 }
 0x22d   : > { %v3416_v20 = vpop.f32.mrb[26].mxu0 }
 0x22e   : > { %v4314_v22 = vpop.f32.mrb[27].mxu0 }
 0x22f   : > { %3456 = vmatpush3.bf16.msra.mxu1 %v1786_v52 }
 0x232   : > { %3458 = vmatmul.mubr.msk.bf16.vlgmr.msra.gmra.mrb[20].mxu1 %vm1799_vm1, %v1798_v56 }
 0x233   : > { %v4316_v23 = vpop.f32.mrb[28].mxu0 }
 0x234   : > { %v1732_v24 = vpop.f32.mrb[29].mxu0 }
 0x235   : > { %v4319_v26 = vpop.f32.mrb[30].mxu0 }
 0x236   : > { %v1735_v27 = vpop.f32.mrb[31].mxu0 }
 0x23b   : > { %v4324_v32 = vpop.f32.mrb[32].mxu0 }
 0x23c   : > { %v4326_v34 = vpop.f32.mrb[33].mxu0 }
 0x23d   : > { %v4328_v36 = vpop.f32.mrb[34].mxu0 }
 0x23e   : > { %v4330_v37 = vpop.f32.mrb[35].mxu0 }
 0x243   : > { %v4334_v40 = vpop.f32.mrb[36].mxu0 }
 0x244   : > { %v4336_v41 = vpop.f32.mrb[37].mxu0 }
 0x245   : > { %v4338_v42 = vpop.f32.mrb[38].mxu0 }
 0x246   : > { %v4340_v43 = vpop.f32.mrb[39].mxu0 }
 0x2ed   : > { %v1837_v58 = vpop.f32.mrb[8].mxu1 }
 0x2ee   : > { %v1838_v59 = vadd.f32 %v1837_v58, %v813_v57  ;;  %v3435_v60 = vpop.f32.mrb[9].mxu1 }
 0x2ef   : > { %v1840_v38 = vpop.f32.mrb[10].mxu1 }
 0x2f0   : > { %v3436_v61 = vpop.f32.mrb[11].mxu1  ;;  %v1973_v62 = vsel %vm1972_vm2, %v1838_v59, -inf }
 0x2f1   : > { %1974 = vmax.xlane.f32.xlu1 %v1973_v62 }
 0x2f5   : > { %v1880_v63 = vpop.f32.mrb[12].mxu1 }
 0x2f6   : > { %v1881_v0 = vadd.f32 %v1880_v63, %v813_v57  ;;  %v3443_v1 = vpop.f32.mrb[13].mxu1 }
 0x2f7   : > { %v1883_v3 = vpop.f32.mrb[14].mxu1 }
 0x2f8   : > { %v1976_v4 = vsel %vm1972_vm2, %v1881_v0, -inf  ;;  %v3444_v5 = vpop.f32.mrb[15].mxu1 }
 0x2f9   : > { %1977 = vmax.xlane.f32.xlu1 %v1976_v4 }
 0x2fd   : > { %v1923_v6 = vpop.f32.mrb[16].mxu1 }
 0x2fe   : > { %v1924_v7 = vadd.f32 %v1923_v6, %v813_v57  ;;  %v3451_v8 = vpop.f32.mrb[17].mxu1  ;;  %v1347_v6 = vld [vmem:[%s4097_s19 + $0x88] sm:$0xff] }
 0x2ff   : > { %v1926_v9 = vpop.f32.mrb[18].mxu1 }
 0x300   : > { %v3452_v10 = vpop.f32.mrb[19].mxu1  ;;  %v1979_v11 = vsel %vm1972_vm2, %v1924_v7, -inf }
 0x301   : > { %1980 = vmax.xlane.f32.xlu1 %v1979_v11 }
 0x305   : > { %v1966_v12 = vpop.f32.mrb[20].mxu1 }
 0x306   : > { %v1967_v13 = vadd.f32 %v1966_v12, %v813_v57  ;;  %v3459_v14 = vpop.f32.mrb[21].mxu1 }
 0x307   : > { %v1969_v15 = vpop.f32.mrb[22].mxu1  ;;  %v1356_v14 = vld [vmem:[%s4097_s19 + $0xd0] sm:$0xff] }
 0x308   : > { %v1982_v16 = vsel %vm1972_vm2, %v1967_v13, -inf  ;;  %v3460_v17 = vpop.f32.mrb[23].mxu1 }
 0x309   : > { %1983 = vmax.xlane.f32.xlu1 %v1982_v16  ;;  %v1358_v16 = vld [vmem:[%s4097_s19 + $0xe0] sm:$0xff] }
 0x31a   : > { %1454 = vperm.xlu1 %3591, %v1348_v18  }
 0x31e   : > { %1459 = vperm.xlu1 %3591, %v1349_v19  }
 0x322   : > { %1464 = vperm.xlu1 %3591, %v1350_v21   ;;  %v1361_v21 = vld [vmem:[%s4097_s19 + $0xf8] sm:$0xff] }
 0x326   : > { %1469 = vperm.xlu1 %3591, %v1351_v25  }
 0x32a   : > { %1474 = vperm.xlu1 %3591, %v1352_v28  }
 0x32e   : > { %1479 = vperm.xlu1 %3591, %v1353_v30  }
 0x332   : > { %1489 = vperm.xlu1 %3591, %v1355_v31  }
 0x336   : > { %1499 = vperm.xlu1 %3591, %v1357_v33   ;;  %v1717_v33 = vadd.f32 %v4302_v55, %v4342_v44 }
 0x33a   : > { %1509 = vperm.xlu1 %3591, %v1359_v39  }
 0x37e   : > { %v1975_v45 = vpop.xlane.xlu1 %1974 }
 0x37f   : > { %v1985_v46 = vsub.f32 %v1838_v59, %v1975_v45 }
 0x381   : > { %v1989_v47 = vmul.f32 1.442695, %v1985_v46 }
 0x383   : > { %3688 = vpow2.f32 %v1989_v47 }
 0x386   : > { %v1978_v48 = vpop.xlane.xlu1 %1977 }
 0x387   : > { %v1986_v49 = vsub.f32 %v1881_v0, %v1978_v48 }
 0x389   : > { %v1991_v50 = vmul.f32 1.442695, %v1986_v49 }
 0x38b   : > { %3690 = vpow2.f32 %v1991_v50 }
 0x38d   : > { %v3689_v51 = vpop.eup %3688 }
 0x38e   : > { %v1981_v52 = vpop.xlane.xlu1 %1980  ;;  %v1997_v53 = vsel %vm1972_vm2, %v3689_v51, 0.0 }
 0x38f   : > { %v1987_v29 = vsub.f32 %v1924_v7, %v1981_v52  ;;  %1998 = vadd.xlane.f32.xlu0 %v1997_v53 }
 0x391   : > { %v1993_v56 = vmul.f32 1.442695, %v1987_v29 }
 0x393   : > { %3692 = vpow2.f32 %v1993_v56 }
 0x395   : > { %v4345_v57 = vpop.eup %3690 }
 0x396   : > { %v1984_v58 = vpop.xlane.xlu1 %1983  ;;  %v2000_v59 = vsel %vm1972_vm2, %v4345_v57, 0.0 }
 0x397   : > { %v1988_v60 = vsub.f32 %v1967_v13, %v1984_v58  ;;  %2001 = vadd.xlane.f32.xlu1 %v2000_v59 }
 0x399   : > { %v1995_v38 = vmul.f32 1.442695, %v1988_v60 }
 0x39a   : > { %v1455_v61 = vpop.permute.xlu1 %1454 }
 0x39b   : > { %3694 = vpow2.f32 %v1995_v38  ;;  %v4354_v1 = vadd.f32 %v4298_v54, %v1455_v61  ;;  %v1354_v54 = vld [vmem:[%s4097_s19 + $0xc0] sm:$0xff] }
 0x39d   : > { %v4349_v62 = vpop.eup %3692 }
 0x39e   : > { %v1460_v63 = vpop.permute.xlu1 %1459  ;;  %v2003_v0 = vsel %vm1972_vm2, %v4349_v62, 0.0 }
 0x39f   : > { %v4356_v3 = vadd.f32 %v3416_v20, %v1460_v63  ;;  %2004 = vadd.xlane.f32.xlu1 %v2003_v0  ;;  %v1360_v20 = vld [vmem:[%s4097_s19 + $0xf0] sm:$0xff]  ;;  %s4639_s19 = sld [smem:[#allocation31_spill]] }
 0x3a1   : > { %v1788_v4 = vpack.c.bf16 %v4356_v3, %v4354_v1 }
 0x3a2   : > { %v1465_v5 = vpop.permute.xlu1 %1464 }
 0x3a3   : > { %v1733_v10 = vadd.f32 %v1732_v24, %v1465_v5  ;;  %v3640_v5 = vld [vmem:[%s4633_s5] sm:$0xff]  }
 0x3a4   : > { %3486 = vmatpush3.bf16.msra.mxu0 %v3640_v5  ;;  %v3682_v5 = vld [vmem:[%s4126_s30 + $0x68] sm:$0xff]  }
 0x3a5   : > { %v4361_v7 = vpop.eup %3694  ;;  %1449 = vperm.xlu0 %3590, %v1347_v6   ;;  %v3641_v6 = vld [vmem:[%s4633_s5 + $0x8] sm:$0xff]   ;;  %3487 = vmatprep.subr.bf16.mxu0 %v3840_v2  ;;  %s4640_s20 = scalar_lea.vmem %s4639_s19, %s4069_s0 }
 0x3a6   : > { %v1470_v8 = vpop.permute.xlu1 %1469  ;;  %v2006_v9 = vsel %vm1972_vm2, %v4361_v7, 0.0 }
 0x3a7   : > { %v1736_v11 = vadd.f32 %v1735_v27, %v1470_v8  ;;  %2007 = vadd.xlane.f32.xlu1 %v2006_v9  ;;  %v3643_v8 = vld [vmem:[%s4633_s5 + $0x18] sm:$0xff]   ;;  %v3644_v9 = vld [vmem:[%s4633_s5 + $0x20] sm:$0xff]  }
 0x3a8   : > { %3488 = vmatpush3.bf16.msra.mxu0 %v3641_v6  ;;  %v3683_v6 = vld [vmem:[%s4126_s30 + $0x28] sm:$0xff]  }
 0x3a9   : > { %v1789_v12 = vpack.c.bf16 %v1736_v11, %v1733_v10  ;;  %1484 = vperm.xlu0 %3590, %v1354_v54   ;;  %3489 = vmatprep.subr.bf16.mxu0 %v3840_v2  ;;  %v3646_v54 = vld [vmem:[%s4633_s5 + $0x30] sm:$0xff]   ;;  %v3647_v10 = vld [vmem:[%s4633_s5 + $0x38] sm:$0xff]  }
 0x3aa   : > { %v1475_v13 = vpop.permute.xlu1 %1474 }
 0x3ab   : > { %v1741_v17 = vadd.f32 %v4316_v23, %v1475_v13 }
 0x3ad   : > { %1494 = vperm.xlu0 %3590, %v1356_v14  }
 0x3ae   : > { %v1480_v15 = vpop.permute.xlu1 %1479 }
 0x3af   : > { %v1744_v18 = vadd.f32 %v4319_v26, %v1480_v15 }
 0x3b1   : > { %v1790_v19 = vpack.c.bf16 %v1744_v18, %v1741_v17  ;;  %1504 = vperm.xlu0 %3590, %v1358_v16  }
 0x3b2   : > { %v1490_v24 = vpop.permute.xlu1 %1489 }
 0x3b3   : > { %v1752_v47 = vadd.f32 %v4330_v37, %v1490_v24 }
 0x3b5   : > { %1514 = vperm.xlu0 %3590, %v1360_v20  }
 0x3b6   : > { %v1500_v25 = vpop.permute.xlu1 %1499 }
 0x3b8   : > { %1519 = vperm.xlu1 %3591, %v1361_v21  }
 0x3ba   : > { %v1510_v28 = vpop.permute.xlu1 %1509 }
 0x3bb   : > { %v1768_v56 = vadd.f32 %v4340_v43, %v1510_v28 }
 0x41c   : > { %v1999_v27 = vpop.xlane.xlu0 %1998 }
 0x41d   : > { %3696 = vrcp.f32 %v1999_v27 }
 0x424   : > { %v1450_v30 = vpop.permute.xlu0 %1449  ;;  %v2002_v31 = vpop.xlane.xlu1 %2001 }
 0x425   : > { %v1720_v23 = vadd.f32 %v4314_v22, %v1450_v30  ;;  %3698 = vrcp.f32 %v2002_v31  ;;  %v1760_v22 = vadd.f32 %v4328_v36, %v1500_v25 }
 0x427   : > { %v3697_v26 = vpop.eup %3696  ;;  %v1787_v39 = vpack.c.bf16 %v1720_v23, %v1717_v33  ;;  %v3130_v33 = vld [vmem:[%s4636_s23] ss:$0 sm:$0xff] }
 0x428   : > { %v1485_v45 = vpop.permute.xlu0 %1484  ;;  %v2013_v46 = vmul.f32 %v3697_v26, %v3689_v51 }
 0x429   : > { %v1749_v48 = vadd.f32 %v4326_v34, %v1485_v45  ;;  %3463 = vmatprep.mubr.msk.bf16.mxu1 %vm1972_vm2, %v1787_v39 }
 0x42a   : > { %v2017_v49 = vpack.c.bf16 %v2013_v46, %v2013_v46 }
 0x42b   : > { %v1791_v50 = vpack.c.bf16 %v1752_v47, %v1749_v48  ;;  %v3708_v47 = vld [vmem:[%s4147_s7] sm:$0xff] }
 0x42c   : > { %3505 = vmatprep.subr.msk.bf16.mxu1 %vm1972_vm2, %v2017_v49  ;;  %v1495_v52 = vpop.permute.xlu0 %1494  ;;  %v2005_v53 = vpop.xlane.xlu1 %2004  ;;  %v2028_v55 = vsel %vm1972_vm2, %v2017_v49, 0  ;;  %v3648_v49 = vld [vmem:[%s4634_s6] ss:$8 sps:$4 sm:$0xff]  }
 0x42d   : > { %v1757_v44 = vadd.f32 %v4324_v32, %v1495_v52  ;;  %3700 = vrcp.f32 %v2005_v53  ;;  %3462 = vmatpush3.bf16.xpose.msra.mxu1 %v2028_v55  ;;  %v3653_v52 = vld [vmem:[%s4634_s6 + $0x14] ss:$8 sps:$4 sm:$0xff]   ;;  %v3651_v53 = vld [vmem:[%s4634_s6 + $0x10] ss:$8 sps:$4 sm:$0xff]   ;;  %v3656_v55 = vld [vmem:[%s4634_s6 + $0x24] ss:$8 sps:$4 sm:$0xff]  }
 0x42f   : > { %v3699_v51 = vpop.eup %3698  ;;  %v1792_v37 = vpack.c.bf16 %v1760_v22, %v1757_v44  ;;  %v3654_v22 = vld [vmem:[%s4634_s6 + $0x20] ss:$8 sps:$4 sm:$0xff]  }
 0x430   : > { %v1505_v29 = vpop.permute.xlu0 %1504  ;;  %v2014_v34 = vmul.f32 %v3699_v51, %v4345_v57 }
 0x431   : > { %v1765_v58 = vadd.f32 %v4336_v41, %v1505_v29 }
 0x432   : > { %v2018_v59 = vpack.c.bf16 %v2014_v34, %v2014_v34  ;;  %v3659_v34 = vld [vmem:[%s4634_s6 + $0x34] ss:$8 sps:$4 sm:$0xff]  }
 0x433   : > { %v1793_v60 = vpack.c.bf16 %v1768_v56, %v1765_v58  ;;  %v3657_v56 = vld [vmem:[%s4634_s6 + $0x30] ss:$8 sps:$4 sm:$0xff]   ;;  %v3662_v58 = vld [vmem:[%s4634_s6 + $0x44] ss:$8 sps:$4 sm:$0xff]  }
 0x434   : > { %3464 = vmatmul.mubr.msk.bf16.vlgmr.msra.gmra.mrb[24].mxu1 %vm1972_vm2, %v1788_v4  ;;  %3506 = vmatprep.subr.msk.bf16.mxu1 %vm1972_vm2, %v2018_v59  ;;  %v2008_v36 = vpop.xlane.xlu1 %2007  ;;  %v2086_v32 = vsel %vm1972_vm2, %v2018_v59, 0  ;;  %v1515_v38 = vpop.permute.xlu0 %1514  ;;  %v3660_v59 = vld [vmem:[%s4634_s6 + $0x40] ss:$8 sps:$4 sm:$0xff]  }
 0x435   : > { %3702 = vrcp.f32 %v2008_v36  ;;  %3468 = vmatpush3.bf16.xpose.msra.mxu1 %v2086_v32  ;;  %3469 = vmatprep.mubr.msk.bf16.mxu1 %vm1972_vm2, %v1789_v12  ;;  %v1773_v41 = vadd.f32 %v4334_v40, %v1515_v38  ;;  %v3663_v36 = vld [vmem:[%s4634_s6 + $0x50] ss:$8 sps:$4 sm:$0xff]   ;;  %v3668_v32 = vld [vmem:[%s4634_s6 + $0x64] ss:$8 sps:$4 sm:$0xff]   ;;  %v3666_v38 = vld [vmem:[%s4634_s6 + $0x60] ss:$8 sps:$4 sm:$0xff]  }
 0x437   : > { %v3701_v61 = vpop.eup %3700 }
 0x438   : > { %v1520_v57 = vpop.permute.xlu1 %1519  ;;  %v2015_v43 = vmul.f32 %v3701_v61, %v4349_v62  ;;  %v3671_v61 = vld [vmem:[%s4634_s6 + $0x74] ss:$8 sps:$4 sm:$0xff]  }
 0x439   : > { %v1776_v63 = vadd.f32 %v4338_v42, %v1520_v57  ;;  %v3669_v57 = vld [vmem:[%s4634_s6 + $0x70] ss:$8 sps:$4 sm:$0xff]  }
 0x43a   : > { %v2019_v0 = vpack.c.bf16 %v2015_v43, %v2015_v43  ;;  %v3672_v43 = vld [vmem:[%s4126_s30 + $0x40] sm:$0xff]  }
 0x43b   : > { %v1794_v1 = vpack.c.bf16 %v1776_v63, %v1773_v41  ;;  %v3673_v41 = vld [vmem:[%s4126_s30] sm:$0xff]   ;;  %v3674_v63 = vld [vmem:[%s4126_s30 + $0x48] sm:$0xff]  }
 0x43c   : > { %3470 = vmatmul.mubr.msk.bf16.vlgmr.msra.gmra.mrb[28].mxu1 %vm1972_vm2, %v1790_v19  ;;  %3507 = vmatprep.subr.msk.bf16.mxu1 %vm1972_vm2, %v2019_v0  ;;  %v2144_v3 = vsel %vm1972_vm2, %v2019_v0, 0  ;;  %v3675_v0 = vld [vmem:[%s4126_s30 + $0x8] sm:$0xff]  }
 0x43d   : > { %3474 = vmatpush3.bf16.xpose.msra.mxu1 %v2144_v3  ;;  %3475 = vmatprep.mubr.msk.bf16.mxu1 %vm1972_vm2, %v1791_v50  ;;  %v3650_v50 = vld [vmem:[%s4634_s6 + $0x4] ss:$8 sps:$4 sm:$0xff]   ;;  %v3677_v3 = vld [vmem:[%s4126_s30 + $0x10] sm:$0xff]  }
 0x43f   : > { %v3703_v4 = vpop.eup %3702 }
 0x440   : > { %v2016_v62 = vmul.f32 %v3703_v4, %v4361_v7  ;;  %v3642_v7 = vld [vmem:[%s4633_s5 + $0x10] sm:$0xff]   ;;  %v3678_v4 = vld [vmem:[%s4126_s30 + $0x58] sm:$0xff]  }
 0x441   : > { %3490 = vmatpush3.bf16.msra.mxu0 %v3642_v7 }
 0x442   : > { %v2020_v40 = vpack.c.bf16 %v2016_v62, %v2016_v62  ;;  %3491 = vmatprep.subr.bf16.mxu0 %v3840_v2  ;;  %v3679_v62 = vld [vmem:[%s4126_s30 + $0x18] sm:$0xff]  }
 0x444   : > { %3476 = vmatmul.mubr.msk.bf16.vlgmr.msra.gmra.mrb[32].mxu1 %vm1972_vm2, %v1792_v37  ;;  %3508 = vmatprep.subr.msk.bf16.mxu1 %vm1972_vm2, %v2020_v40  ;;  %v2202_v42 = vsel %vm1972_vm2, %v2020_v40, 0  ;;  %v3680_v40 = vld [vmem:[%s4126_s30 + $0x60] sm:$0xff]  }
 0x445   : > { %3480 = vmatpush3.bf16.xpose.msra.mxu1 %v2202_v42  ;;  %3481 = vmatprep.mubr.msk.bf16.mxu1 %vm1972_vm2, %v1793_v60  ;;  %v3665_v60 = vld [vmem:[%s4634_s6 + $0x54] ss:$8 sps:$4 sm:$0xff]   ;;  %v3681_v42 = vld [vmem:[%s4126_s30 + $0x20] sm:$0xff]  }
 0x446   : > { %3492 = vmatpush3.bf16.msra.mxu0 %v3643_v8  ;;  %2535 = vmatprep.subr.bf16.mxu1 %v3650_v50 }
 0x447   : > { %3493 = vmatprep.subr.bf16.mxu0 %v3840_v2 }
 0x44a   : > { %3494 = vmatpush3.bf16.msra.mxu0 %v3644_v9 }
 0x44b   : > { %3495 = vmatprep.subr.bf16.mxu0 %v3840_v2 }
 0x44c   : > { %3482 = vmatmul.mubr.msk.bf16.vlgmr.msra.gmra.mrb[36].mxu1 %vm1972_vm2, %v1794_v1  ;;  %v3676_v1 = vld [vmem:[%s4126_s30 + $0x50] sm:$0xff]  }
 0x44d   : > { %2567 = vmatprep.mubr.bf16.mxu1 %v3842_v35  ;;  %v3645_v35 = vld [vmem:[%s4633_s5 + $0x28] sm:$0xff]   ;;  %2536 = vmatpush1.bf16.msra.mxu1 %v3648_v49  ;;  %v3157_v49 = vld [vmem:[%s797_s13] ss:$0 sm:$0xff]  ;;  %s2798_s5 = sshll.u32 %s4147_s7, 4  ;;  %s4489_s5 = int_to_ptr.vmem [resolvable:$true] %s2798_s5 }
 0x44e   : > { %3496 = vmatpush3.bf16.msra.mxu0 %v3645_v35  ;;  %2537 = vmatprep.subr.bf16.mxu1 %v3653_v52  ;;  %s3739_s23 = scalar_lea.vmem %s4489_s5, 128 }
 0x44f   : > { %3497 = vmatprep.subr.bf16.mxu0 %v3840_v2  ;;  %p3740_p0 = scmp.ne.s32.totalorder %s4489_s5, %s3739_s23 }
 0x451   : > { %2538 = vmatpush1.bf16.msra.mxu1 %v3651_v53  ;;  %p3741_p13 = pnand %p3740_p0, %p4647_p7 }
 0x452   : > { %3498 = vmatpush3.bf16.msra.mxu0 %v3646_v54  ;;  %2539 = vmatprep.subr.bf16.mxu1 %v3656_v55  ;;  %v3139_v54 = vld [vmem:[%s4638_s15] ss:$0 sm:$0xff] }
 0x453   : > { %3499 = vmatprep.subr.bf16.mxu0 %v3840_v2  ;;  %p3742_p4 = pneg %p3741_p13 }
 0x455   : > { %2540 = vmatpush1.bf16.msra.mxu1 %v3654_v22 }
 0x456   : > { %3500 = vmatpush3.bf16.msra.mxu0 %v3647_v10  ;;  %2541 = vmatprep.subr.bf16.mxu1 %v3659_v34 }
 0x457   : > { %3279 = vmatprep.subr.bf16.mxu0 %v3672_v43 }
 0x459   : > { %2542 = vmatpush1.bf16.msra.mxu1 %v3657_v56 }
 0x45a   : > { %2543 = vmatprep.subr.bf16.mxu1 %v3662_v58 }
 0x45d   : > { %2544 = vmatpush1.bf16.msra.mxu1 %v3660_v59 }
 0x45e   : > { %2545 = vmatprep.subr.bf16.mxu1 %v3665_v60 }
 0x461   : > { %2546 = vmatpush1.bf16.msra.mxu1 %v3663_v36  ;;  %v3174_v36 = vld [vmem:[%s800_s18] ss:$0 sm:$0xff]  ;;  %s2785_s18 = scalar_lea.sflag [#allocation4], %s4053_s14 }
 0x462   : > { %2547 = vmatprep.subr.bf16.mxu1 %v3668_v32 }
 0x465   : > { %2548 = vmatpush1.bf16.msra.mxu1 %v3666_v38  ;;  %v3175_v38 = vld [vmem:[%s803_s3] ss:$0 sm:$0xff]  ;;  %s3843_s3 = smov [#allocation5]  }
 0x466   : > { %2549 = vmatprep.subr.bf16.mxu1 %v3671_v61  ;;  %s3743_s0 = sshll.u32 %s3843_s3, 4  ;;  %s3744_s0 = int_to_ptr.vmem [resolvable:$false] %s3743_s0 }
 0x467   : > { %s3745_s24 = scalar_lea.vmem %s3744_s0, 256  ;;  %p3746_p6 = scmp.lt.s32.totalorder %s4489_s5, %s3744_s0 }
 0x468   : > { %p3747_p3 = scmp.lt.s32.totalorder %s3745_s24, %s3739_s23 }
 0x469   : > { %2550 = vmatpush1.bf16.msra.mxu1 %v3669_v57 }
 0x46a   : > { %p3748_p8 = por %p3747_p3, %p3746_p6 }
 0x46c   : > { %p3749_p12 = pnand %p3748_p8, %p3742_p4 }
 0x507   : > { %v3465_v11 = vpop.f32.mrb[24].mxu1 }
 0x508   : > { %v2064_v12 = vpop.f32.mrb[25].mxu1 }
 0x509   : > { %2253 = vxpose.xlu0.b32.start [1/16] (narrow) %v2064_v12, 8  ;;  %v3466_v13 = vpop.f32.mrb[26].mxu1 }
 0x50a   : > { %v2067_v14 = vpop.f32.mrb[27].mxu1 }
 0x50d   : > { %2254 = vxpose.xlu0.b32.cont [2/16] (narrow) %v2067_v14, 8 }
 0x50f   : > { %v3471_v15 = vpop.f32.mrb[28].mxu1 }
 0x510   : > { %v2122_v16 = vpop.f32.mrb[29].mxu1 }
 0x511   : > { %2255 = vxpose.xlu0.b32.cont [3/16] (narrow) %v3465_v11, 8  ;;  %v3472_v17 = vpop.f32.mrb[30].mxu1  ;;  %v3140_v11 = vld [vmem:[%s4640_s20] ss:$0 sm:$0xff] }
 0x512   : > { %v2125_v18 = vpop.f32.mrb[31].mxu1 }
 0x515   : > { %2256 = vxpose.xlu0.b32.cont [4/16] (narrow) %v3466_v13, 8 }
 0x517   : > { %v3477_v19 = vpop.f32.mrb[32].mxu1 }
 0x518   : > { %v2180_v20 = vpop.f32.mrb[33].mxu1 }
 0x519   : > { %2257 = vxpose.xlu0.b32.cont [5/16] (narrow) %v2122_v16, 8  ;;  %v3478_v21 = vpop.f32.mrb[34].mxu1  ;;  %v3685_v16 = vld [vmem:[%s4126_s30 + $0x30] sm:$0xff]  }
 0x51a   : > { %v2183_v24 = vpop.f32.mrb[35].mxu1 }
 0x51d   : > { %2258 = vxpose.xlu0.b32.cont [6/16] (narrow) %v2125_v18, 8  ;;  %v3687_v18 = vld [vmem:[%s4126_s30 + $0x38] sm:$0xff]  }
 0x51f   : > { %v3483_v2 = vpop.f32.mrb[36].mxu1 }
 0x520   : > { %v2238_v25 = vpop.f32.mrb[37].mxu1 }
 0x521   : > { %2259 = vxpose.xlu0.b32.cont [7/16] (narrow) %v3471_v15, 8  ;;  %v3484_v27 = vpop.f32.mrb[38].mxu1  ;;  %v3684_v15 = vld [vmem:[%s4126_s30 + $0x70] sm:$0xff]  }
 0x522   : > { %v2241_v28 = vpop.f32.mrb[39].mxu1 }
 0x525   : > { %2260 = vxpose.xlu0.b32.cont [8/16] (narrow) %v3472_v17, 8  ;;  %v3686_v17 = vld [vmem:[%s4126_s30 + $0x78] sm:$0xff]   ;;  %s4642_s30 = sld [smem:[#allocation11_spill]] }
 0x529   : > { %2261 = vxpose.xlu0.b32.cont [9/16] (narrow) %v2180_v20, 8 }
 0x52b   : > { %s3177_s27 = sshll.u32 %s4642_s30, 7 }
 0x52c   : > { %s4487_s10 = scalar_lea.hbm %s4646_s9, %s3177_s27 }
 0x52d   : > { %2262 = vxpose.xlu0.b32.cont [10/16] (narrow) %v2183_v24, 8  ;;  %v2443_v24 = vld [vmem:[%s4131_s25] sm:$0x3] }
 0x531   : > { %2263 = vxpose.xlu0.b32.cont [11/16] (narrow) %v3477_v19, 8  ;;  %v2445_v19 = vlaneseq }
 0x533   : > { %v2446_v20 = vshrl.u32 %v2445_v19, 7 }
 0x535   : > { %2264 = vxpose.xlu0.b32.cont [12/16] (narrow) %v3478_v21, 8  ;;  %v2447_v21 = vsub.s32 0, %v2446_v20 }
 0x539   : > { %2265 = vxpose.xlu0.b32.cont [13/16] (narrow) %v2238_v25, 8  ;;  %v2448_v25 = vrot.slane %v2443_v24, %v2447_v21 }
 0x53d   : > { %2266 = vxpose.xlu0.b32.cont [14/16] (narrow) %v2241_v28, 8 }
 0x541   : > { %2267 = vxpose.xlu0.b32.cont [15/16] (narrow) %v3483_v2, 8  ;;  %v2451_v2 = vsub.s32 1, %v2446_v20 }
 0x545   : > { %2268 = vxpose.xlu0.b32.end [16/16] (narrow) %v3484_v27, 8  ;;  %v2452_v27 = vrot.slane %v2443_v24, %v2451_v2 }
 0x589   : > { %v2269_v30 = vpop.trf.xlu0 }
 0x58a   : > { %v2285_v31 = vpack.c.bf16 %v2269_v30, %v2269_v30 }
 0x58c   : > { %3502 = vmatmul.mubr.bf16.vlgmr.msra.gmra.mrb[40].mxu0 %v2285_v31 }
 0x58d   : > { %3280 = vmatpush3.bf16.msra.mxu0 %v3673_v41 }
 0x58e   : > { %3281 = vmatprep.subr.bf16.mxu0 %v3674_v63 }
 0x591   : > { %3282 = vmatpush3.bf16.msra.mxu0 %v3675_v0 }
 0x592   : > { %3283 = vmatprep.subr.bf16.mxu0 %v3676_v1 }
 0x595   : > { %3284 = vmatpush3.bf16.msra.mxu0 %v3677_v3 }
 0x596   : > { %3285 = vmatprep.subr.bf16.mxu0 %v3678_v4 }
 0x599   : > { %3286 = vmatpush3.bf16.msra.mxu0 %v3679_v62 }
 0x59a   : > { %3287 = vmatprep.subr.bf16.mxu0 %v3680_v40 }
 0x59d   : > { %3288 = vmatpush3.bf16.msra.mxu0 %v3681_v42 }
 0x59e   : > { %3289 = vmatprep.subr.bf16.mxu0 %v3682_v5 }
 0x5a1   : > { %3290 = vmatpush3.bf16.msra.mxu0 %v3683_v6 }
 0x5a2   : > { %3291 = vmatprep.subr.bf16.mxu0 %v3684_v15 }
 0x5a5   : > { %3292 = vmatpush3.bf16.msra.mxu0 %v3685_v16 }
 0x5a6   : > { %3293 = vmatprep.subr.bf16.mxu0 %v3686_v17 }
 0x5a9   : > { %3294 = vmatpush3.bf16.msra.mxu0 %v3687_v18 }
 0x65f   : > { %v2391_v23 = vpop.f32.mrb[40].mxu0 }
 0x660   : > { %v2392_v26 = vadd.f32 %v3130_v33, %v2391_v23  ;;  %v3503_v39 = vpop.f32.mrb[41].mxu0 }
 0x661   : > { %v2394_v45 = vpop.f32.mrb[42].mxu0 }
 0x662   : > { %v3504_v46 = vpop.f32.mrb[43].mxu0  ;;  %v2397_v48 = vadd.f32 %v3708_v47, %v2392_v26 }
 0x664   : > { %2400 = vadd.xlane.f32.xlu1 %v2397_v48 }
 0x6f1   : > { %v2401_v44 = vpop.xlane.xlu1 %2400 }
 0x6f2   : > { %v2403_v51 = vmul.f32 0.0078125, %v2401_v44 }
 0x6f4   : > { %v2404_v37 = vsub.f32 %v2397_v48, %v2403_v51 }
 0x6f6   : > { %v2405_v29 = vmul.f32 %v2404_v37, %v2404_v37 }
 0x6f8   : > { %2406 = vadd.xlane.f32.xlu1 %v2405_v29 }
 0x785   : > { %v2407_v7 = vpop.xlane.xlu1 %2406 }
 0x786   : > { %v2408_v8 = vmul.f32 0.0078125, %v2407_v7 }
 0x788   : > { %v2409_v9 = vadd.f32 1e-05, %v2408_v8 }
 0x78a   : > { %3704 = vrsqrt.f32 %v2409_v9 }
 0x794   : > { %v3705_v35 = vpop.eup %3704 }
 0x795   : > { %v2411_v10 = vmul.f32 %v3705_v35, %v2404_v37 }
 0x797   : > { %v2418_v12 = vmul.f32 %v3139_v54, %v2411_v10 }
 0x799   : > { %v2425_v13 = vadd.f32 %v3140_v11, %v2418_v12 }
 0x79b   : > { %v2426_v14 = vpack.c.bf16 %v2425_v13, %v2425_v13 }
 0x79d   : > { %2568 = vmatmul.mubr.bf16.vlgmr.msra.gmra.mrb[40].mxu1 %v2426_v14 }
 0x870   : > { %v2569_v28 = vpop.f32.mrb[40].mxu1 }
 0x871   : > { %v2570_v30 = vadd.f32 %v2569_v28, %v2448_v25  ;;  %v2571_v31 = vpop.f32.mrb[41].mxu1 }
 0x872   : > { %v2572_v33 = vadd.f32 %v2571_v31, %v2452_v27  ;;  %v2573_v23 = vpop.f32.mrb[42].mxu1 }
 0x873   : > { %v2576_v26 = vmax.f32 %v2570_v30, 0.0  ;;  %v2574_v39 = vpop.f32.mrb[43].mxu1 }
 0x874   : > { %v2577_v45 = vmax.f32 %v2572_v33, 0.0 }
 0x875   : > { %v2578_v47 = vpack.c.bf16 %v2576_v26, %v2576_v26 }
 0x876   : > { %v2579_v46 = vpack.c.bf16 %v2577_v45, %v2577_v45 }
 0x878   : > { %2747 = vmatprep.mubr.bf16.mxu0 %v2579_v46 }
 0x879   : > { %2748 = vmatmul.mubr.bf16.vlgmr.msra.gmra.mrb[44].mxu0 %v2578_v47 }
 0x94c   : > { %v3295_v48 = vpop.f32.mrb[44].mxu0 }
 0x94d   : > { %v3296_v50 = vpop.f32.mrb[45].mxu0 }
 0x94e   : > { %v3297_v52 = vadd.f32 %v3296_v50, %v3295_v48  ;;  %v3298_v53 = vpop.f32.mrb[46].mxu0 }
 0x94f   : > { %v3299_v55 = vpop.f32.mrb[47].mxu0 }
 0x950   : > { %v2750_v22 = vadd.f32 %v3297_v52, %v3157_v49 }
 0x952   : > { %v2755_v44 = vadd.f32 %v2750_v22, %v2425_v13 }
 0x954   : > { %2758 = vadd.xlane.f32.xlu1 %v2755_v44 }
 0x9e1   : > { %v2759_v51 = vpop.xlane.xlu1 %2758 }
 0x9e2   : > { %v2760_v37 = vmul.f32 0.0078125, %v2759_v51 }
 0x9e4   : > { %v2761_v29 = vsub.f32 %v2755_v44, %v2760_v37 }
 0x9e6   : > { %v2762_v34 = vmul.f32 %v2761_v29, %v2761_v29 }
 0x9e8   : > { %2763 = vadd.xlane.f32.xlu1 %v2762_v34 }
 0xa75   : > { %v2764_v56 = vpop.xlane.xlu1 %2763 }
 0xa76   : > { %v2765_v58 = vmul.f32 0.0078125, %v2764_v56 }
 0xa78   : > { %v2766_v59 = vadd.f32 1e-05, %v2765_v58 }
 0xa7a   : > { %3706 = vrsqrt.f32 %v2766_v59 }
 0xa84   : > { %v3707_v60 = vpop.eup %3706 }
 0xa85   : > { %v2768_v32 = vmul.f32 %v3707_v60, %v2761_v29 }
 0xa87   : > { %v2775_v61 = vmul.f32 %v3174_v36, %v2768_v32 }
 0xa89   : > { %v2782_v57 = vadd.f32 %v3175_v38, %v2775_v61 }
 0xa8b   : > { %2783 = vst [vmem:[%s4147_s7] sm:$0xff] %v2782_v57 }
 0xa8c   : > { %3752 = shalt.err (!%p3749_p12)
}
 0xa8d   : > { %s3753_s14 = scalar_lea.hbm %s4487_s10, 128  ;;  %s3757_s26 = scalar_lea.hbm %s4646_s9, 256 }
 0xa8e   : > { %p3754_p1 = scmp.ne.s32.totalorder %s4487_s10, %s3753_s14  ;;  %p3758_p10 = scmp.lt.u32.totalorder %s4487_s10, %s4646_s9 }
 0xa8f   : > { %p3759_p11 = scmp.lt.u32.totalorder %s3757_s26, %s3753_s14  ;;  %p3761_p0 = scmp.lt.u32.totalorder %s3753_s14, %s4487_s10 }
 0xa90   : > { %p3755_p2 = pnand %p3754_p1, %p4647_p7 }
 0xa91   : > { %p3760_p9 = por %p3759_p11, %p3758_p10 }
 0xa92   : > { %p3756_p5 = pneg %p3755_p2 }
 0xa93   : > { %p3762_p13 = por %p3761_p0, %p3760_p9 }
 0xa95   : > { %p3763_p4 = pnand %p3762_p13, %p3756_p5 }
 0xa97   : > { %3766 = shalt.err (!%p3763_p4)
}
 0xa98   : > { %3511 = dma.vmem_to_hbm [thread:$0]  (%p4647_p7), %s4489_s5, 128, %s4487_s10, %s2785_s18  }
 0xa99 PF: > { %s4648_s29 = sld [smem:[#allocation14_spill]]  ;;  %s4649_s19 = sld [smem:[#allocation8_spill]] }
 0xa9a   : > { %s4650_s20 = sld [smem:[#allocation18_spill]] }
 0xa9f   : > { %p3522_p6 = scmp.ge.s32.totalorder %s4648_s29, 2  ;;  %s2810_s1 = sand.u32 1, %s4649_s19  }
 0xaa0   : > { %p4651_p3 = scmp.ne.s32.totalorder %s4650_s20, 0  ;;  %s2811_s21 = scalar_lea.sflag [#allocation4], %s2810_s1 }
 0xaa2   : > { %p3518_p8 = pnand %p3522_p6, %p4651_p3 }
 0xaa4   : > { %3804 = dma.done.wait (!%p3518_p8), %s2811_s21, 128  }
 0xaa5   : > { %3806 = vsyncadd (!%p3518_p8), %s2811_s21, 4294967168  ;;  %s32_s28 = sadd.s32 1, %s4648_s29   ;;  %s4652_s21 = sld [smem:[#allocation9_spill]] }
 0xaa6   : > { %p29_p12 = scmp.ge.s32.totalorder %s32_s28, 6   ;;  %s4653_s22 = sld [smem:[#allocation10_spill]] }
 0xaa7   : > { %s4654_s23 = sld [smem:[#allocation19_spill]]  ;;  %s4655_s24 = sld [smem:[#allocation12_spill]] }
 0xaa8   : > { %s4656_s25 = sld [smem:[#allocation13_spill]]  ;;  %s4657_s26 = sld [smem:[#allocation15_spill]] }
 0xaa9   : > { %s4658_s27 = sld [smem:[#allocation16_spill]]  ;;  %31 = sbr.rel (!%p29_p12) target bundleno = 25 (0x19), region = 178 }
 0xab0   :  { %2816 = vsyncpa [#allocation3], 1 }
 0xab1   :  { %2818 = vsyncpa [#allocation3 + $0x1], 1 }
 0xab2   :  { %2819 = vsyncpa [#allocation4], 1 }
 0xab3   :  { %2821 = vsyncpa [#allocation4 + $0x1], 1 }

</bundles_post_ra>
